<compile_context>
chip_gen: v7x
topology: tpu7x:2x2x1
jax: 0.10.0
libtpu: 0.0.40
codegen_flags: <defaults>
</compile_context>

<pallas_src>
import jax
import jax.numpy as jnp
from jax.experimental import pallas as pl
from jax.experimental.pallas import tpu as pltpu

# ----- synthetic config -----
VOCAB = 128
HIDDEN = 32
NUM_HEADS = 4
HEAD_DIM = HIDDEN // NUM_HEADS
INTERMEDIATE = 64
NUM_LAYERS = 2
MAX_POS = 32
TYPE_VOCAB = 2
NUM_LABELS = 2
LN_EPS = 1e-12
MATMUL_DTYPE = jnp.bfloat16   # MXU inputs; accumulation / epilogues stay f32


# -------------------- in-kernel helpers (f32 epilogues) --------------------

def _ln(x, g, b):
    mu = jnp.mean(x, axis=-1, keepdims=True)
    var = jnp.mean((x - mu) ** 2, axis=-1, keepdims=True)
    return (x - mu) * jax.lax.rsqrt(var + LN_EPS) * g + b


def _gelu(y):
    # TODO(synk): HF BERT uses erf-based GELU; tanh approximation used here for
    # robust Mosaic lowering.
    return 0.5 * y * (1.0 + jnp.tanh(0.7978845608028654 * (y + 0.044715 * y * y * y)))


def _mm(a, b):
    return jnp.dot(a.astype(MATMUL_DTYPE), b.astype(MATMUL_DTYPE),
                   preferred_element_type=jnp.float32)


# -------------------- the single fused kernel --------------------

def _bert_fused_kernel(emb_ref, mask_ref, onehot_ref,
                       emb_g_ref, emb_b_ref,
                       wqkv_ref, bqkv_ref, wo_ref, bo_ref, ln1_g_ref, ln1_b_ref,
                       wi_ref, bi_ref, wfo_ref, bfo_ref, ln2_g_ref, ln2_b_ref,
                       pool_w_ref, pool_b_ref, cls_w_ref, cls_b_ref,
                       logits_ref, probs_ref, loss_ref,
                       x_ref):
    layer = pl.program_id(0)
    B = mask_ref.shape[0]
    S = mask_ref.shape[2]
    H = HIDDEN
    DH = HEAD_DIM

    # --- step 0: embedding LayerNorm, seed the resident activation scratch ---
    @pl.when(layer == 0)
    def _():
        x_ref[...] = _ln(emb_ref[...], emb_g_ref[...], emb_b_ref[...])

    x = x_ref[...]                                                  # (B*S, H) f32

    # --- fused QKV projection: one (B*S, H) x (H, 3H) MXU matmul ---
    qkv = _mm(x, wqkv_ref[0]) + bqkv_ref[0]                         # (B*S, 3H)

    # --- per-(batch, head) masked softmax attention; head merge folded into
    #     a single (B*S, H) x (H, H) output-projection matmul ---
    scale = 1.0 / float(DH) ** 0.5
    ctx_rows = []
    for b in range(B):
        r0, r1 = b * S, (b + 1) * S
        mask_b = mask_ref[b]                                        # (1, S) additive
        head_ctxs = []
        for h in range(NUM_HEADS):
            q = qkv[r0:r1, h * DH:(h + 1) * DH]
            k = qkv[r0:r1, H + h * DH:H + (h + 1) * DH]
            v = qkv[r0:r1, 2 * H + h * DH:2 * H + (h + 1) * DH]
            s = jax.lax.dot_general(q.astype(MATMUL_DTYPE), k.astype(MATMUL_DTYPE),
                                    (((1,), (1,)), ((), ())),
                                    preferred_element_type=jnp.float32)   # (S, S)
            s = s * scale + mask_b
            s = s - jnp.max(s, axis=-1, keepdims=True)
            p = jnp.exp(s)
            p = p * pl.reciprocal(jnp.sum(p, axis=-1, keepdims=True), approx=True)
            head_ctxs.append(_mm(p, v))                             # (S, DH)
        ctx_rows.append(jnp.concatenate(head_ctxs, axis=-1))        # (S, H)
    ctx = jnp.concatenate(ctx_rows, axis=0)                         # (B*S, H)

    attn = _mm(ctx, wo_ref[0]) + bo_ref[0]                          # (B*S, H)

    # --- residual + LN1, FFN (GELU), residual + LN2 ---
    h1 = _ln(attn + x, ln1_g_ref[0], ln1_b_ref[0])
    inter = _gelu(_mm(h1, wi_ref[0]) + bi_ref[0])                   # (B*S, I)
    ffn = _mm(inter, wfo_ref[0]) + bfo_ref[0]                       # (B*S, H)
    x_new = _ln(ffn + h1, ln2_g_ref[0], ln2_b_ref[0])
    x_ref[...] = x_new                                              # stays in VMEM

    # --- last step: pooler + classifier + softmax + cross-entropy head ---
    @pl.when(layer == pl.num_programs(0) - 1)
    def _():
        cls = jnp.concatenate([x_new[b * S:b * S + 1, :] for b in range(B)],
                              axis=0)                               # (B, H)
        pooled = jnp.tanh(_mm(cls, pool_w_ref[...]) + pool_b_ref[...])
        logits = _mm(pooled, cls_w_ref[...]) + cls_b_ref[...]       # (B, L)
        logits_ref[...] = logits

        m = jnp.max(logits, axis=-1, keepdims=True)
        e = jnp.exp(logits - m)
        z = jnp.sum(e, axis=-1, keepdims=True)
        probs_ref[...] = e / z                                      # exact: sums to 1

        logp = (logits - m) - jnp.log(z)
        per_ex = -jnp.sum(onehot_ref[...] * logp, axis=-1, keepdims=True)   # (B, 1)
        loss_ref[...] = jnp.mean(per_ex, axis=0, keepdims=True)             # (1, 1)


def _const_spec(shape):
    zeros = (0,) * len(shape)
    return pl.BlockSpec(shape, lambda l, z=zeros: z)


def _layer_spec(shape):
    zeros = (0,) * len(shape)
    return pl.BlockSpec((1,) + shape, lambda l, z=zeros: (l,) + z)


def fused_bert(emb2d, mask_add, onehot, p):
    BS, H = emb2d.shape
    B, _, S = mask_add.shape
    I = INTERMEDIATE
    L = NUM_LABELS

    logits, probs, loss = pl.pallas_call(
        _bert_fused_kernel,
        grid=(NUM_LAYERS,),
        in_specs=[
            _const_spec((BS, H)),          # emb
            _const_spec((B, 1, S)),        # additive attention mask
            _const_spec((B, L)),           # one-hot labels
            _const_spec((1, H)),           # emb LN gamma
            _const_spec((1, H)),           # emb LN beta
            _layer_spec((H, 3 * H)),       # wqkv
            _layer_spec((1, 3 * H)),       # bqkv
            _layer_spec((H, H)),           # wo (heads merged)
            _layer_spec((1, H)),           # bo
            _layer_spec((1, H)),           # ln1 gamma
            _layer_spec((1, H)),           # ln1 beta
            _layer_spec((H, I)),           # wi
            _layer_spec((1, I)),           # bi
            _layer_spec((I, H)),           # wfo
            _layer_spec((1, H)),           # bfo
            _layer_spec((1, H)),           # ln2 gamma
            _layer_spec((1, H)),           # ln2 beta
            _const_spec((H, H)),           # pooler W
            _const_spec((1, H)),           # pooler b
            _const_spec((H, L)),           # classifier W
            _const_spec((1, L)),           # classifier b
        ],
        out_specs=(
            _const_spec((B, L)),
            _const_spec((B, L)),
            _const_spec((1, 1)),
        ),
        out_shape=(
            jax.ShapeDtypeStruct((B, L), jnp.float32),
            jax.ShapeDtypeStruct((B, L), jnp.float32),
            jax.ShapeDtypeStruct((1, 1), jnp.float32),
        ),
        scratch_shapes=[pltpu.VMEM((BS, H), jnp.float32)],
        compiler_params=pltpu.CompilerParams(dimension_semantics=("arbitrary",)),
    )(emb2d, mask_add, onehot,
      p["emb_ln_g"], p["emb_ln_b"],
      p["wqkv"], p["bqkv"], p["wo"], p["bo"], p["ln1_g"], p["ln1_b"],
      p["wi"], p["bi"], p["wfo"], p["bfo"], p["ln2_g"], p["ln2_b"],
      p["pool_w"], p["pool_b"], p["cls_w"], p["cls_b"])
    return logits, probs, loss


# -------------------- parameter init (deterministic, synthetic, f32 masters) --------------------

def init_params(key):
    def nrm(k, shape):
        return 0.02 * jax.random.normal(k, shape, dtype=jnp.float32)

    keys = jax.random.split(key, 9)
    p = {
        "word_emb": nrm(keys[0], (VOCAB, HIDDEN)),
        "pos_emb": nrm(keys[1], (MAX_POS, HIDDEN)),
        "type_emb": nrm(keys[2], (TYPE_VOCAB, HIDDEN)),
        "emb_ln_g": jnp.ones((1, HIDDEN), jnp.float32),
        "emb_ln_b": jnp.zeros((1, HIDDEN), jnp.float32),
        "pool_w": nrm(keys[3], (HIDDEN, HIDDEN)),
        "pool_b": jnp.zeros((1, HIDDEN), jnp.float32),
        "cls_w": nrm(keys[4], (HIDDEN, NUM_LABELS)),
        "cls_b": jnp.zeros((1, NUM_LABELS), jnp.float32),
        # per-layer weights stacked along a leading layer axis
        "wqkv": nrm(keys[5], (NUM_LAYERS, HIDDEN, 3 * HIDDEN)),
        "bqkv": jnp.zeros((NUM_LAYERS, 1, 3 * HIDDEN), jnp.float32),
        "wo": nrm(keys[6], (NUM_LAYERS, HIDDEN, HIDDEN)),          # heads pre-merged
        "bo": jnp.zeros((NUM_LAYERS, 1, HIDDEN), jnp.float32),
        "ln1_g": jnp.ones((NUM_LAYERS, 1, HIDDEN), jnp.float32),
        "ln1_b": jnp.zeros((NUM_LAYERS, 1, HIDDEN), jnp.float32),
        "wi": nrm(keys[7], (NUM_LAYERS, HIDDEN, INTERMEDIATE)),
        "bi": jnp.zeros((NUM_LAYERS, 1, INTERMEDIATE), jnp.float32),
        "wfo": nrm(keys[8], (NUM_LAYERS, INTERMEDIATE, HIDDEN)),
        "bfo": jnp.zeros((NUM_LAYERS, 1, HIDDEN), jnp.float32),
        "ln2_g": jnp.ones((NUM_LAYERS, 1, HIDDEN), jnp.float32),
        "ln2_b": jnp.zeros((NUM_LAYERS, 1, HIDDEN), jnp.float32),
    }
    return p


# -------------------- forward pass (matches BertModel.forward semantics) --------------------

def bert_forward(params, batch_seqs, batch_seq_masks, batch_seq_segments, labels):
    B, S = batch_seqs.shape
    assert S <= MAX_POS, "sequence length exceeds position-embedding table"

    # embeddings: word + position + token_type (gathers = plain-JAX glue)
    emb = (params["word_emb"][batch_seqs]
           + params["pos_emb"][jnp.arange(S)][None, :, :]
           + params["type_emb"][batch_seq_segments])
    emb2d = emb.reshape(B * S, HIDDEN).astype(jnp.float32)

    # extended additive attention mask: (1 - mask) * -10000, shared across heads
    mask_add = ((1.0 - batch_seq_masks.astype(jnp.float32)) * -10000.0).reshape(B, 1, S)

    onehot = jax.nn.one_hot(labels, NUM_LABELS, dtype=jnp.float32)

    logits, probabilities, loss = fused_bert(emb2d, mask_add, onehot, params)
    return loss[0, 0], logits, probabilities


if __name__ == "__main__":
    B, S = 2, 8
    key = jax.random.PRNGKey(0)
    pk, ik, lk = jax.random.split(key, 3)

    params = init_params(pk)
    batch_seqs = jax.random.randint(ik, (B, S), 0, VOCAB, dtype=jnp.int32)
    batch_seq_masks = jnp.ones((B, S), dtype=jnp.int32).at[:, S - 2:].set(0)   # some padding
    batch_seq_segments = jnp.concatenate(
        [jnp.zeros((B, S // 2), jnp.int32), jnp.ones((B, S // 2), jnp.int32)], axis=1)
    labels = jax.random.randint(lk, (B,), 0, NUM_LABELS, dtype=jnp.int32)

    fwd = jax.jit(bert_forward)
    loss, logits, probs = fwd(params, batch_seqs, batch_seq_masks, batch_seq_segments, labels)
    jax.block_until_ready((loss, logits, probs))

    assert logits.shape == (B, NUM_LABELS)
    assert probs.shape == (B, NUM_LABELS)
    assert loss.shape == ()
    assert bool(jnp.isfinite(loss)) and bool(jnp.all(jnp.isfinite(probs)))
    print("KERNEL_OK")
</pallas_src>

<mosaic_0001>
module attributes {stable_mosaic.version = 11 : i64} {
  func.func @_bert_fused_kernel(%arg0: i32, %arg1: memref<16x32xf32, #tpu.memory_space<vmem>>, %arg2: memref<2x1x8xf32, #tpu.memory_space<vmem>>, %arg3: memref<2x2xf32, #tpu.memory_space<vmem>>, %arg4: memref<1x32xf32, #tpu.memory_space<vmem>>, %arg5: memref<1x32xf32, #tpu.memory_space<vmem>>, %arg6: memref<1x32x96xf32, #tpu.memory_space<vmem>>, %arg7: memref<1x1x96xf32, #tpu.memory_space<vmem>>, %arg8: memref<1x32x32xf32, #tpu.memory_space<vmem>>, %arg9: memref<1x1x32xf32, #tpu.memory_space<vmem>>, %arg10: memref<1x1x32xf32, #tpu.memory_space<vmem>>, %arg11: memref<1x1x32xf32, #tpu.memory_space<vmem>>, %arg12: memref<1x32x64xf32, #tpu.memory_space<vmem>>, %arg13: memref<1x1x64xf32, #tpu.memory_space<vmem>>, %arg14: memref<1x64x32xf32, #tpu.memory_space<vmem>>, %arg15: memref<1x1x32xf32, #tpu.memory_space<vmem>>, %arg16: memref<1x1x32xf32, #tpu.memory_space<vmem>>, %arg17: memref<1x1x32xf32, #tpu.memory_space<vmem>>, %arg18: memref<32x32xf32, #tpu.memory_space<vmem>>, %arg19: memref<1x32xf32, #tpu.memory_space<vmem>>, %arg20: memref<32x2xf32, #tpu.memory_space<vmem>>, %arg21: memref<1x2xf32, #tpu.memory_space<vmem>>, %arg22: memref<2x2xf32, #tpu.memory_space<vmem>>, %arg23: memref<2x2xf32, #tpu.memory_space<vmem>>, %arg24: memref<1x1xf32, #tpu.memory_space<vmem>>, %arg25: memref<16x32xf32, #tpu.memory_space<vmem>>) attributes {dimension_semantics = [#tpu.dimension_semantics<arbitrary>], iteration_bounds = array<i64: 2>, scalar_prefetch = 0 : i64, scratch_operands = 1 : i64, tpu.core_type = #tpu.core_type<tc>, window_params = [{pipeline_mode = #tpu.pipeline_mode<synchronous>, transform_indices = @transform_0, window_bounds = array<i64: 16, 32>}, {pipeline_mode = #tpu.pipeline_mode<synchronous>, transform_indices = @transform_1, window_bounds = array<i64: 2, 1, 8>}, {pipeline_mode = #tpu.pipeline_mode<synchronous>, transform_indices = @transform_2, window_bounds = array<i64: 2, 2>}, {pipeline_mode = #tpu.pipeline_mode<synchronous>, transform_indices = @transform_3, window_bounds = array<i64: 1, 32>}, {pipeline_mode = #tpu.pipeline_mode<synchronous>, transform_indices = @transform_4, window_bounds = array<i64: 1, 32>}, {transform_indices = @transform_5, window_bounds = array<i64: 1, 32, 96>}, {transform_indices = @transform_6, window_bounds = array<i64: 1, 1, 96>}, {transform_indices = @transform_7, window_bounds = array<i64: 1, 32, 32>}, {transform_indices = @transform_8, window_bounds = array<i64: 1, 1, 32>}, {transform_indices = @transform_9, window_bounds = array<i64: 1, 1, 32>}, {transform_indices = @transform_10, window_bounds = array<i64: 1, 1, 32>}, {transform_indices = @transform_11, window_bounds = array<i64: 1, 32, 64>}, {transform_indices = @transform_12, window_bounds = array<i64: 1, 1, 64>}, {transform_indices = @transform_13, window_bounds = array<i64: 1, 64, 32>}, {transform_indices = @transform_14, window_bounds = array<i64: 1, 1, 32>}, {transform_indices = @transform_15, window_bounds = array<i64: 1, 1, 32>}, {transform_indices = @transform_16, window_bounds = array<i64: 1, 1, 32>}, {pipeline_mode = #tpu.pipeline_mode<synchronous>, transform_indices = @transform_17, window_bounds = array<i64: 32, 32>}, {pipeline_mode = #tpu.pipeline_mode<synchronous>, transform_indices = @transform_18, window_bounds = array<i64: 1, 32>}, {pipeline_mode = #tpu.pipeline_mode<synchronous>, transform_indices = @transform_19, window_bounds = array<i64: 32, 2>}, {pipeline_mode = #tpu.pipeline_mode<synchronous>, transform_indices = @transform_20, window_bounds = array<i64: 1, 2>}, {pipeline_mode = #tpu.pipeline_mode<synchronous>, transform_indices = @transform_21, window_bounds = array<i64: 2, 2>}, {pipeline_mode = #tpu.pipeline_mode<synchronous>, transform_indices = @transform_22, window_bounds = array<i64: 2, 2>}, {pipeline_mode = #tpu.pipeline_mode<synchronous>, transform_indices = @transform_23, window_bounds = array<i64: 1, 1>}]} {
    %c0_i32 = arith.constant 0 : i32
    %0 = arith.cmpi eq, %arg0, %c0_i32 : i32
    %1 = arith.extui %0 : i1 to i32
    %c0_i32_0 = arith.constant 0 : i32
    %2 = arith.cmpi ne, %1, %c0_i32_0 : i32
    scf.if %2 {
      %c0_103 = arith.constant 0 : index
      %c0_104 = arith.constant 0 : index
      %302 = vector.load %arg1[%c0_103, %c0_104] : memref<16x32xf32, #tpu.memory_space<vmem>>, vector<16x32xf32>
      %c0_105 = arith.constant 0 : index
      %c0_106 = arith.constant 0 : index
      %303 = vector.load %arg4[%c0_105, %c0_106] : memref<1x32xf32, #tpu.memory_space<vmem>>, vector<1x32xf32>
      %c0_107 = arith.constant 0 : index
      %c0_108 = arith.constant 0 : index
      %304 = vector.load %arg5[%c0_107, %c0_108] : memref<1x32xf32, #tpu.memory_space<vmem>>, vector<1x32xf32>
      %cst_109 = arith.constant dense<0.000000e+00> : vector<16xf32>
      %305 = vector.multi_reduction <add>, %302, %cst_109 [1] : vector<16x32xf32> to vector<16xf32>
      %306 = vector.shape_cast %305 : vector<16xf32> to vector<16x1xf32>
      %cst_110 = arith.constant 3.200000e+01 : f32
      %307 = vector.broadcast %cst_110 : f32 to vector<16x1xf32>
      %308 = arith.divf %306, %307 : vector<16x1xf32>
      %309 = vector.broadcast %308 : vector<16x1xf32> to vector<16x32xf32>
      %310 = arith.subf %302, %309 : vector<16x32xf32>
      %311 = arith.mulf %310, %310 : vector<16x32xf32>
      %cst_111 = arith.constant dense<0.000000e+00> : vector<16xf32>
      %312 = vector.multi_reduction <add>, %311, %cst_111 [1] : vector<16x32xf32> to vector<16xf32>
      %313 = vector.shape_cast %312 : vector<16xf32> to vector<16x1xf32>
      %cst_112 = arith.constant 3.200000e+01 : f32
      %314 = vector.broadcast %cst_112 : f32 to vector<16x1xf32>
      %315 = arith.divf %313, %314 : vector<16x1xf32>
      %316 = vector.broadcast %308 : vector<16x1xf32> to vector<16x32xf32>
      %317 = arith.subf %302, %316 : vector<16x32xf32>
      %cst_113 = arith.constant 9.99999996E-13 : f32
      %318 = vector.broadcast %cst_113 : f32 to vector<16x1xf32>
      %319 = arith.addf %315, %318 : vector<16x1xf32>
      %320 = math.rsqrt %319 : vector<16x1xf32>
      %321 = vector.broadcast %320 : vector<16x1xf32> to vector<16x32xf32>
      %322 = arith.mulf %317, %321 : vector<16x32xf32>
      %323 = vector.broadcast %303 : vector<1x32xf32> to vector<16x32xf32>
      %324 = arith.mulf %322, %323 : vector<16x32xf32>
      %325 = vector.broadcast %304 : vector<1x32xf32> to vector<16x32xf32>
      %326 = arith.addf %324, %325 : vector<16x32xf32>
      %c0_114 = arith.constant 0 : index
      %c0_115 = arith.constant 0 : index
      %327 = vector.load %arg25[%c0_114, %c0_115] : memref<16x32xf32, #tpu.memory_space<vmem>>, vector<16x32xf32>
      tpu.vector_store %arg25[%c0_114, %c0_115], %326 {strides = array<i32>} : memref<16x32xf32, #tpu.memory_space<vmem>>, vector<16x32xf32>,
    } else {
    }
    %c0 = arith.constant 0 : index
    %c0_1 = arith.constant 0 : index
    %3 = vector.load %arg25[%c0, %c0_1] : memref<16x32xf32, #tpu.memory_space<vmem>>, vector<16x32xf32>
    %c0_2 = arith.constant 0 : index
    %c0_3 = arith.constant 0 : index
    %c0_4 = arith.constant 0 : index
    %4 = vector.load %arg6[%c0_2, %c0_3, %c0_4] : memref<1x32x96xf32, #tpu.memory_space<vmem>>, vector<1x32x96xf32>
    %5 = vector.shape_cast %4 : vector<1x32x96xf32> to vector<32x96xf32>
    %6 = arith.truncf %3 : vector<16x32xf32> to vector<16x32xbf16>
    %7 = arith.truncf %5 : vector<32x96xf32> to vector<32x96xbf16>
    %cst = arith.constant dense<0.000000e+00> : vector<16x96xf32>
    %8 = tpu.matmul %6, %7, %cst {dimension_numbers = #tpu.dot_dimension_numbers<[1], [0], [0], [1], [0, 0, 1, 1], [], []>} : vector<16x32xbf16>, vector<32x96xbf16>, vector<16x96xf32> -> vector<16x96xf32>
    %c0_5 = arith.constant 0 : index
    %c0_6 = arith.constant 0 : index
    %c0_7 = arith.constant 0 : index
    %9 = vector.load %arg7[%c0_5, %c0_6, %c0_7] : memref<1x1x96xf32, #tpu.memory_space<vmem>>, vector<1x1x96xf32>
    %10 = vector.shape_cast %9 : vector<1x1x96xf32> to vector<1x96xf32>
    %11 = vector.broadcast %10 : vector<1x96xf32> to vector<16x96xf32>
    %12 = arith.addf %8, %11 : vector<16x96xf32>
    %c0_8 = arith.constant 0 : index
    %c0_9 = arith.constant 0 : index
    %c0_10 = arith.constant 0 : index
    %13 = vector.load %arg2[%c0_8, %c0_9, %c0_10] : memref<2x1x8xf32, #tpu.memory_space<vmem>>, vector<1x1x8xf32>
    %14 = vector.shape_cast %13 : vector<1x1x8xf32> to vector<1x8xf32>
    %15 = vector.extract_strided_slice %12 {offsets = [0, 0], sizes = [8, 8], strides = [1, 1]} : vector<16x96xf32> to vector<8x8xf32>
    %16 = vector.extract_strided_slice %12 {offsets = [0, 32], sizes = [8, 8], strides = [1, 1]} : vector<16x96xf32> to vector<8x8xf32>
    %17 = vector.extract_strided_slice %12 {offsets = [0, 64], sizes = [8, 8], strides = [1, 1]} : vector<16x96xf32> to vector<8x8xf32>
    %18 = arith.truncf %15 : vector<8x8xf32> to vector<8x8xbf16>
    %19 = arith.truncf %16 : vector<8x8xf32> to vector<8x8xbf16>
    %cst_11 = arith.constant dense<0.000000e+00> : vector<8x8xf32>
    %20 = tpu.matmul %18, %19, %cst_11 {dimension_numbers = #tpu.dot_dimension_numbers<[1], [1], [0], [0], [0, 0, 1, 0], [], []>} : vector<8x8xbf16>, vector<8x8xbf16>, vector<8x8xf32> -> vector<8x8xf32>
    %cst_12 = arith.constant 0.353553385 : f32
    %21 = vector.broadcast %cst_12 : f32 to vector<8x8xf32>
    %22 = arith.mulf %20, %21 : vector<8x8xf32>
    %23 = vector.broadcast %14 : vector<1x8xf32> to vector<8x8xf32>
    %24 = arith.addf %22, %23 : vector<8x8xf32>
    %cst_13 = arith.constant dense<0xFF800000> : vector<8xf32>
    %25 = vector.multi_reduction <maximumf>, %24, %cst_13 [1] : vector<8x8xf32> to vector<8xf32>
    %26 = vector.shape_cast %25 : vector<8xf32> to vector<8x1xf32>
    %27 = vector.broadcast %26 : vector<8x1xf32> to vector<8x8xf32>
    %28 = arith.subf %24, %27 : vector<8x8xf32>
    %29 = math.exp %28 : vector<8x8xf32>
    %cst_14 = arith.constant dense<0.000000e+00> : vector<8xf32>
    %30 = vector.multi_reduction <add>, %29, %cst_14 [1] : vector<8x8xf32> to vector<8xf32>
    %31 = vector.shape_cast %30 : vector<8xf32> to vector<8x1xf32>
    %32 = tpu.reciprocal %31 {approx = true} : vector<8x1xf32> -> vector<8x1xf32>
    %33 = vector.broadcast %32 : vector<8x1xf32> to vector<8x8xf32>
    %34 = arith.mulf %29, %33 : vector<8x8xf32>
    %35 = arith.truncf %34 : vector<8x8xf32> to vector<8x8xbf16>
    %36 = arith.truncf %17 : vector<8x8xf32> to vector<8x8xbf16>
    %cst_15 = arith.constant dense<0.000000e+00> : vector<8x8xf32>
    %37 = tpu.matmul %35, %36, %cst_15 {dimension_numbers = #tpu.dot_dimension_numbers<[1], [0], [0], [1], [0, 0, 1, 1], [], []>} : vector<8x8xbf16>, vector<8x8xbf16>, vector<8x8xf32> -> vector<8x8xf32>
    %38 = vector.extract_strided_slice %12 {offsets = [0, 8], sizes = [8, 8], strides = [1, 1]} : vector<16x96xf32> to vector<8x8xf32>
    %39 = vector.extract_strided_slice %12 {offsets = [0, 40], sizes = [8, 8], strides = [1, 1]} : vector<16x96xf32> to vector<8x8xf32>
    %40 = vector.extract_strided_slice %12 {offsets = [0, 72], sizes = [8, 8], strides = [1, 1]} : vector<16x96xf32> to vector<8x8xf32>
    %41 = arith.truncf %38 : vector<8x8xf32> to vector<8x8xbf16>
    %42 = arith.truncf %39 : vector<8x8xf32> to vector<8x8xbf16>
    %cst_16 = arith.constant dense<0.000000e+00> : vector<8x8xf32>
    %43 = tpu.matmul %41, %42, %cst_16 {dimension_numbers = #tpu.dot_dimension_numbers<[1], [1], [0], [0], [0, 0, 1, 0], [], []>} : vector<8x8xbf16>, vector<8x8xbf16>, vector<8x8xf32> -> vector<8x8xf32>
    %cst_17 = arith.constant 0.353553385 : f32
    %44 = vector.broadcast %cst_17 : f32 to vector<8x8xf32>
    %45 = arith.mulf %43, %44 : vector<8x8xf32>
    %46 = vector.broadcast %14 : vector<1x8xf32> to vector<8x8xf32>
    %47 = arith.addf %45, %46 : vector<8x8xf32>
    %cst_18 = arith.constant dense<0xFF800000> : vector<8xf32>
    %48 = vector.multi_reduction <maximumf>, %47, %cst_18 [1] : vector<8x8xf32> to vector<8xf32>
    %49 = vector.shape_cast %48 : vector<8xf32> to vector<8x1xf32>
    %50 = vector.broadcast %49 : vector<8x1xf32> to vector<8x8xf32>
    %51 = arith.subf %47, %50 : vector<8x8xf32>
    %52 = math.exp %51 : vector<8x8xf32>
    %cst_19 = arith.constant dense<0.000000e+00> : vector<8xf32>
    %53 = vector.multi_reduction <add>, %52, %cst_19 [1] : vector<8x8xf32> to vector<8xf32>
    %54 = vector.shape_cast %53 : vector<8xf32> to vector<8x1xf32>
    %55 = tpu.reciprocal %54 {approx = true} : vector<8x1xf32> -> vector<8x1xf32>
    %56 = vector.broadcast %55 : vector<8x1xf32> to vector<8x8xf32>
    %57 = arith.mulf %52, %56 : vector<8x8xf32>
    %58 = arith.truncf %57 : vector<8x8xf32> to vector<8x8xbf16>
    %59 = arith.truncf %40 : vector<8x8xf32> to vector<8x8xbf16>
    %cst_20 = arith.constant dense<0.000000e+00> : vector<8x8xf32>
    %60 = tpu.matmul %58, %59, %cst_20 {dimension_numbers = #tpu.dot_dimension_numbers<[1], [0], [0], [1], [0, 0, 1, 1], [], []>} : vector<8x8xbf16>, vector<8x8xbf16>, vector<8x8xf32> -> vector<8x8xf32>
    %61 = vector.extract_strided_slice %12 {offsets = [0, 16], sizes = [8, 8], strides = [1, 1]} : vector<16x96xf32> to vector<8x8xf32>
    %62 = vector.extract_strided_slice %12 {offsets = [0, 48], sizes = [8, 8], strides = [1, 1]} : vector<16x96xf32> to vector<8x8xf32>
    %63 = vector.extract_strided_slice %12 {offsets = [0, 80], sizes = [8, 8], strides = [1, 1]} : vector<16x96xf32> to vector<8x8xf32>
    %64 = arith.truncf %61 : vector<8x8xf32> to vector<8x8xbf16>
    %65 = arith.truncf %62 : vector<8x8xf32> to vector<8x8xbf16>
    %cst_21 = arith.constant dense<0.000000e+00> : vector<8x8xf32>
    %66 = tpu.matmul %64, %65, %cst_21 {dimension_numbers = #tpu.dot_dimension_numbers<[1], [1], [0], [0], [0, 0, 1, 0], [], []>} : vector<8x8xbf16>, vector<8x8xbf16>, vector<8x8xf32> -> vector<8x8xf32>
    %cst_22 = arith.constant 0.353553385 : f32
    %67 = vector.broadcast %cst_22 : f32 to vector<8x8xf32>
    %68 = arith.mulf %66, %67 : vector<8x8xf32>
    %69 = vector.broadcast %14 : vector<1x8xf32> to vector<8x8xf32>
    %70 = arith.addf %68, %69 : vector<8x8xf32>
    %cst_23 = arith.constant dense<0xFF800000> : vector<8xf32>
    %71 = vector.multi_reduction <maximumf>, %70, %cst_23 [1] : vector<8x8xf32> to vector<8xf32>
    %72 = vector.shape_cast %71 : vector<8xf32> to vector<8x1xf32>
    %73 = vector.broadcast %72 : vector<8x1xf32> to vector<8x8xf32>
    %74 = arith.subf %70, %73 : vector<8x8xf32>
    %75 = math.exp %74 : vector<8x8xf32>
    %cst_24 = arith.constant dense<0.000000e+00> : vector<8xf32>
    %76 = vector.multi_reduction <add>, %75, %cst_24 [1] : vector<8x8xf32> to vector<8xf32>
    %77 = vector.shape_cast %76 : vector<8xf32> to vector<8x1xf32>
    %78 = tpu.reciprocal %77 {approx = true} : vector<8x1xf32> -> vector<8x1xf32>
    %79 = vector.broadcast %78 : vector<8x1xf32> to vector<8x8xf32>
    %80 = arith.mulf %75, %79 : vector<8x8xf32>
    %81 = arith.truncf %80 : vector<8x8xf32> to vector<8x8xbf16>
    %82 = arith.truncf %63 : vector<8x8xf32> to vector<8x8xbf16>
    %cst_25 = arith.constant dense<0.000000e+00> : vector<8x8xf32>
    %83 = tpu.matmul %81, %82, %cst_25 {dimension_numbers = #tpu.dot_dimension_numbers<[1], [0], [0], [1], [0, 0, 1, 1], [], []>} : vector<8x8xbf16>, vector<8x8xbf16>, vector<8x8xf32> -> vector<8x8xf32>
    %84 = vector.extract_strided_slice %12 {offsets = [0, 24], sizes = [8, 8], strides = [1, 1]} : vector<16x96xf32> to vector<8x8xf32>
    %85 = vector.extract_strided_slice %12 {offsets = [0, 56], sizes = [8, 8], strides = [1, 1]} : vector<16x96xf32> to vector<8x8xf32>
    %86 = vector.extract_strided_slice %12 {offsets = [0, 88], sizes = [8, 8], strides = [1, 1]} : vector<16x96xf32> to vector<8x8xf32>
    %87 = arith.truncf %84 : vector<8x8xf32> to vector<8x8xbf16>
    %88 = arith.truncf %85 : vector<8x8xf32> to vector<8x8xbf16>
    %cst_26 = arith.constant dense<0.000000e+00> : vector<8x8xf32>
    %89 = tpu.matmul %87, %88, %cst_26 {dimension_numbers = #tpu.dot_dimension_numbers<[1], [1], [0], [0], [0, 0, 1, 0], [], []>} : vector<8x8xbf16>, vector<8x8xbf16>, vector<8x8xf32> -> vector<8x8xf32>
    %cst_27 = arith.constant 0.353553385 : f32
    %90 = vector.broadcast %cst_27 : f32 to vector<8x8xf32>
    %91 = arith.mulf %89, %90 : vector<8x8xf32>
    %92 = vector.broadcast %14 : vector<1x8xf32> to vector<8x8xf32>
    %93 = arith.addf %91, %92 : vector<8x8xf32>
    %cst_28 = arith.constant dense<0xFF800000> : vector<8xf32>
    %94 = vector.multi_reduction <maximumf>, %93, %cst_28 [1] : vector<8x8xf32> to vector<8xf32>
    %95 = vector.shape_cast %94 : vector<8xf32> to vector<8x1xf32>
    %96 = vector.broadcast %95 : vector<8x1xf32> to vector<8x8xf32>
    %97 = arith.subf %93, %96 : vector<8x8xf32>
    %98 = math.exp %97 : vector<8x8xf32>
    %cst_29 = arith.constant dense<0.000000e+00> : vector<8xf32>
    %99 = vector.multi_reduction <add>, %98, %cst_29 [1] : vector<8x8xf32> to vector<8xf32>
    %100 = vector.shape_cast %99 : vector<8xf32> to vector<8x1xf32>
    %101 = tpu.reciprocal %100 {approx = true} : vector<8x1xf32> -> vector<8x1xf32>
    %102 = vector.broadcast %101 : vector<8x1xf32> to vector<8x8xf32>
    %103 = arith.mulf %98, %102 : vector<8x8xf32>
    %104 = arith.truncf %103 : vector<8x8xf32> to vector<8x8xbf16>
    %105 = arith.truncf %86 : vector<8x8xf32> to vector<8x8xbf16>
    %cst_30 = arith.constant dense<0.000000e+00> : vector<8x8xf32>
    %106 = tpu.matmul %104, %105, %cst_30 {dimension_numbers = #tpu.dot_dimension_numbers<[1], [0], [0], [1], [0, 0, 1, 1], [], []>} : vector<8x8xbf16>, vector<8x8xbf16>, vector<8x8xf32> -> vector<8x8xf32>
    %107 = tpu.concatenate %37, %60, %83, %106 in 1 : vector<8x8xf32>, vector<8x8xf32>, vector<8x8xf32>, vector<8x8xf32> -> vector<8x32xf32>
    %c1 = arith.constant 1 : index
    %c0_31 = arith.constant 0 : index
    %c0_32 = arith.constant 0 : index
    %108 = vector.load %arg2[%c1, %c0_31, %c0_32] : memref<2x1x8xf32, #tpu.memory_space<vmem>>, vector<1x1x8xf32>
    %109 = vector.shape_cast %108 : vector<1x1x8xf32> to vector<1x8xf32>
    %110 = vector.extract_strided_slice %12 {offsets = [8, 0], sizes = [8, 8], strides = [1, 1]} : vector<16x96xf32> to vector<8x8xf32>
    %111 = vector.extract_strided_slice %12 {offsets = [8, 32], sizes = [8, 8], strides = [1, 1]} : vector<16x96xf32> to vector<8x8xf32>
    %112 = vector.extract_strided_slice %12 {offsets = [8, 64], sizes = [8, 8], strides = [1, 1]} : vector<16x96xf32> to vector<8x8xf32>
    %113 = arith.truncf %110 : vector<8x8xf32> to vector<8x8xbf16>
    %114 = arith.truncf %111 : vector<8x8xf32> to vector<8x8xbf16>
    %cst_33 = arith.constant dense<0.000000e+00> : vector<8x8xf32>
    %115 = tpu.matmul %113, %114, %cst_33 {dimension_numbers = #tpu.dot_dimension_numbers<[1], [1], [0], [0], [0, 0, 1, 0], [], []>} : vector<8x8xbf16>, vector<8x8xbf16>, vector<8x8xf32> -> vector<8x8xf32>
    %cst_34 = arith.constant 0.353553385 : f32
    %116 = vector.broadcast %cst_34 : f32 to vector<8x8xf32>
    %117 = arith.mulf %115, %116 : vector<8x8xf32>
    %118 = vector.broadcast %109 : vector<1x8xf32> to vector<8x8xf32>
    %119 = arith.addf %117, %118 : vector<8x8xf32>
    %cst_35 = arith.constant dense<0xFF800000> : vector<8xf32>
    %120 = vector.multi_reduction <maximumf>, %119, %cst_35 [1] : vector<8x8xf32> to vector<8xf32>
    %121 = vector.shape_cast %120 : vector<8xf32> to vector<8x1xf32>
    %122 = vector.broadcast %121 : vector<8x1xf32> to vector<8x8xf32>
    %123 = arith.subf %119, %122 : vector<8x8xf32>
    %124 = math.exp %123 : vector<8x8xf32>
    %cst_36 = arith.constant dense<0.000000e+00> : vector<8xf32>
    %125 = vector.multi_reduction <add>, %124, %cst_36 [1] : vector<8x8xf32> to vector<8xf32>
    %126 = vector.shape_cast %125 : vector<8xf32> to vector<8x1xf32>
    %127 = tpu.reciprocal %126 {approx = true} : vector<8x1xf32> -> vector<8x1xf32>
    %128 = vector.broadcast %127 : vector<8x1xf32> to vector<8x8xf32>
    %129 = arith.mulf %124, %128 : vector<8x8xf32>
    %130 = arith.truncf %129 : vector<8x8xf32> to vector<8x8xbf16>
    %131 = arith.truncf %112 : vector<8x8xf32> to vector<8x8xbf16>
    %cst_37 = arith.constant dense<0.000000e+00> : vector<8x8xf32>
    %132 = tpu.matmul %130, %131, %cst_37 {dimension_numbers = #tpu.dot_dimension_numbers<[1], [0], [0], [1], [0, 0, 1, 1], [], []>} : vector<8x8xbf16>, vector<8x8xbf16>, vector<8x8xf32> -> vector<8x8xf32>
    %133 = vector.extract_strided_slice %12 {offsets = [8, 8], sizes = [8, 8], strides = [1, 1]} : vector<16x96xf32> to vector<8x8xf32>
    %134 = vector.extract_strided_slice %12 {offsets = [8, 40], sizes = [8, 8], strides = [1, 1]} : vector<16x96xf32> to vector<8x8xf32>
    %135 = vector.extract_strided_slice %12 {offsets = [8, 72], sizes = [8, 8], strides = [1, 1]} : vector<16x96xf32> to vector<8x8xf32>
    %136 = arith.truncf %133 : vector<8x8xf32> to vector<8x8xbf16>
    %137 = arith.truncf %134 : vector<8x8xf32> to vector<8x8xbf16>
    %cst_38 = arith.constant dense<0.000000e+00> : vector<8x8xf32>
    %138 = tpu.matmul %136, %137, %cst_38 {dimension_numbers = #tpu.dot_dimension_numbers<[1], [1], [0], [0], [0, 0, 1, 0], [], []>} : vector<8x8xbf16>, vector<8x8xbf16>, vector<8x8xf32> -> vector<8x8xf32>
    %cst_39 = arith.constant 0.353553385 : f32
    %139 = vector.broadcast %cst_39 : f32 to vector<8x8xf32>
    %140 = arith.mulf %138, %139 : vector<8x8xf32>
    %141 = vector.broadcast %109 : vector<1x8xf32> to vector<8x8xf32>
    %142 = arith.addf %140, %141 : vector<8x8xf32>
    %cst_40 = arith.constant dense<0xFF800000> : vector<8xf32>
    %143 = vector.multi_reduction <maximumf>, %142, %cst_40 [1] : vector<8x8xf32> to vector<8xf32>
    %144 = vector.shape_cast %143 : vector<8xf32> to vector<8x1xf32>
    %145 = vector.broadcast %144 : vector<8x1xf32> to vector<8x8xf32>
    %146 = arith.subf %142, %145 : vector<8x8xf32>
    %147 = math.exp %146 : vector<8x8xf32>
    %cst_41 = arith.constant dense<0.000000e+00> : vector<8xf32>
    %148 = vector.multi_reduction <add>, %147, %cst_41 [1] : vector<8x8xf32> to vector<8xf32>
    %149 = vector.shape_cast %148 : vector<8xf32> to vector<8x1xf32>
    %150 = tpu.reciprocal %149 {approx = true} : vector<8x1xf32> -> vector<8x1xf32>
    %151 = vector.broadcast %150 : vector<8x1xf32> to vector<8x8xf32>
    %152 = arith.mulf %147, %151 : vector<8x8xf32>
    %153 = arith.truncf %152 : vector<8x8xf32> to vector<8x8xbf16>
    %154 = arith.truncf %135 : vector<8x8xf32> to vector<8x8xbf16>
    %cst_42 = arith.constant dense<0.000000e+00> : vector<8x8xf32>
    %155 = tpu.matmul %153, %154, %cst_42 {dimension_numbers = #tpu.dot_dimension_numbers<[1], [0], [0], [1], [0, 0, 1, 1], [], []>} : vector<8x8xbf16>, vector<8x8xbf16>, vector<8x8xf32> -> vector<8x8xf32>
    %156 = vector.extract_strided_slice %12 {offsets = [8, 16], sizes = [8, 8], strides = [1, 1]} : vector<16x96xf32> to vector<8x8xf32>
    %157 = vector.extract_strided_slice %12 {offsets = [8, 48], sizes = [8, 8], strides = [1, 1]} : vector<16x96xf32> to vector<8x8xf32>
    %158 = vector.extract_strided_slice %12 {offsets = [8, 80], sizes = [8, 8], strides = [1, 1]} : vector<16x96xf32> to vector<8x8xf32>
    %159 = arith.truncf %156 : vector<8x8xf32> to vector<8x8xbf16>
    %160 = arith.truncf %157 : vector<8x8xf32> to vector<8x8xbf16>
    %cst_43 = arith.constant dense<0.000000e+00> : vector<8x8xf32>
    %161 = tpu.matmul %159, %160, %cst_43 {dimension_numbers = #tpu.dot_dimension_numbers<[1], [1], [0], [0], [0, 0, 1, 0], [], []>} : vector<8x8xbf16>, vector<8x8xbf16>, vector<8x8xf32> -> vector<8x8xf32>
    %cst_44 = arith.constant 0.353553385 : f32
    %162 = vector.broadcast %cst_44 : f32 to vector<8x8xf32>
    %163 = arith.mulf %161, %162 : vector<8x8xf32>
    %164 = vector.broadcast %109 : vector<1x8xf32> to vector<8x8xf32>
    %165 = arith.addf %163, %164 : vector<8x8xf32>
    %cst_45 = arith.constant dense<0xFF800000> : vector<8xf32>
    %166 = vector.multi_reduction <maximumf>, %165, %cst_45 [1] : vector<8x8xf32> to vector<8xf32>
    %167 = vector.shape_cast %166 : vector<8xf32> to vector<8x1xf32>
    %168 = vector.broadcast %167 : vector<8x1xf32> to vector<8x8xf32>
    %169 = arith.subf %165, %168 : vector<8x8xf32>
    %170 = math.exp %169 : vector<8x8xf32>
    %cst_46 = arith.constant dense<0.000000e+00> : vector<8xf32>
    %171 = vector.multi_reduction <add>, %170, %cst_46 [1] : vector<8x8xf32> to vector<8xf32>
    %172 = vector.shape_cast %171 : vector<8xf32> to vector<8x1xf32>
    %173 = tpu.reciprocal %172 {approx = true} : vector<8x1xf32> -> vector<8x1xf32>
    %174 = vector.broadcast %173 : vector<8x1xf32> to vector<8x8xf32>
    %175 = arith.mulf %170, %174 : vector<8x8xf32>
    %176 = arith.truncf %175 : vector<8x8xf32> to vector<8x8xbf16>
    %177 = arith.truncf %158 : vector<8x8xf32> to vector<8x8xbf16>
    %cst_47 = arith.constant dense<0.000000e+00> : vector<8x8xf32>
    %178 = tpu.matmul %176, %177, %cst_47 {dimension_numbers = #tpu.dot_dimension_numbers<[1], [0], [0], [1], [0, 0, 1, 1], [], []>} : vector<8x8xbf16>, vector<8x8xbf16>, vector<8x8xf32> -> vector<8x8xf32>
    %179 = vector.extract_strided_slice %12 {offsets = [8, 24], sizes = [8, 8], strides = [1, 1]} : vector<16x96xf32> to vector<8x8xf32>
    %180 = vector.extract_strided_slice %12 {offsets = [8, 56], sizes = [8, 8], strides = [1, 1]} : vector<16x96xf32> to vector<8x8xf32>
    %181 = vector.extract_strided_slice %12 {offsets = [8, 88], sizes = [8, 8], strides = [1, 1]} : vector<16x96xf32> to vector<8x8xf32>
    %182 = arith.truncf %179 : vector<8x8xf32> to vector<8x8xbf16>
    %183 = arith.truncf %180 : vector<8x8xf32> to vector<8x8xbf16>
    %cst_48 = arith.constant dense<0.000000e+00> : vector<8x8xf32>
    %184 = tpu.matmul %182, %183, %cst_48 {dimension_numbers = #tpu.dot_dimension_numbers<[1], [1], [0], [0], [0, 0, 1, 0], [], []>} : vector<8x8xbf16>, vector<8x8xbf16>, vector<8x8xf32> -> vector<8x8xf32>
    %cst_49 = arith.constant 0.353553385 : f32
    %185 = vector.broadcast %cst_49 : f32 to vector<8x8xf32>
    %186 = arith.mulf %184, %185 : vector<8x8xf32>
    %187 = vector.broadcast %109 : vector<1x8xf32> to vector<8x8xf32>
    %188 = arith.addf %186, %187 : vector<8x8xf32>
    %cst_50 = arith.constant dense<0xFF800000> : vector<8xf32>
    %189 = vector.multi_reduction <maximumf>, %188, %cst_50 [1] : vector<8x8xf32> to vector<8xf32>
    %190 = vector.shape_cast %189 : vector<8xf32> to vector<8x1xf32>
    %191 = vector.broadcast %190 : vector<8x1xf32> to vector<8x8xf32>
    %192 = arith.subf %188, %191 : vector<8x8xf32>
    %193 = math.exp %192 : vector<8x8xf32>
    %cst_51 = arith.constant dense<0.000000e+00> : vector<8xf32>
    %194 = vector.multi_reduction <add>, %193, %cst_51 [1] : vector<8x8xf32> to vector<8xf32>
    %195 = vector.shape_cast %194 : vector<8xf32> to vector<8x1xf32>
    %196 = tpu.reciprocal %195 {approx = true} : vector<8x1xf32> -> vector<8x1xf32>
    %197 = vector.broadcast %196 : vector<8x1xf32> to vector<8x8xf32>
    %198 = arith.mulf %193, %197 : vector<8x8xf32>
    %199 = arith.truncf %198 : vector<8x8xf32> to vector<8x8xbf16>
    %200 = arith.truncf %181 : vector<8x8xf32> to vector<8x8xbf16>
    %cst_52 = arith.constant dense<0.000000e+00> : vector<8x8xf32>
    %201 = tpu.matmul %199, %200, %cst_52 {dimension_numbers = #tpu.dot_dimension_numbers<[1], [0], [0], [1], [0, 0, 1, 1], [], []>} : vector<8x8xbf16>, vector<8x8xbf16>, vector<8x8xf32> -> vector<8x8xf32>
    %202 = tpu.concatenate %132, %155, %178, %201 in 1 : vector<8x8xf32>, vector<8x8xf32>, vector<8x8xf32>, vector<8x8xf32> -> vector<8x32xf32>
    %203 = tpu.concatenate %107, %202 in 0 : vector<8x32xf32>, vector<8x32xf32> -> vector<16x32xf32>
    %c0_53 = arith.constant 0 : index
    %c0_54 = arith.constant 0 : index
    %c0_55 = arith.constant 0 : index
    %204 = vector.load %arg8[%c0_53, %c0_54, %c0_55] : memref<1x32x32xf32, #tpu.memory_space<vmem>>, vector<1x32x32xf32>
    %205 = vector.shape_cast %204 : vector<1x32x32xf32> to vector<32x32xf32>
    %206 = arith.truncf %203 : vector<16x32xf32> to vector<16x32xbf16>
    %207 = arith.truncf %205 : vector<32x32xf32> to vector<32x32xbf16>
    %cst_56 = arith.constant dense<0.000000e+00> : vector<16x32xf32>
    %208 = tpu.matmul %206, %207, %cst_56 {dimension_numbers = #tpu.dot_dimension_numbers<[1], [0], [0], [1], [0, 0, 1, 1], [], []>} : vector<16x32xbf16>, vector<32x32xbf16>, vector<16x32xf32> -> vector<16x32xf32>
    %c0_57 = arith.constant 0 : index
    %c0_58 = arith.constant 0 : index
    %c0_59 = arith.constant 0 : index
    %209 = vector.load %arg9[%c0_57, %c0_58, %c0_59] : memref<1x1x32xf32, #tpu.memory_space<vmem>>, vector<1x1x32xf32>
    %210 = vector.shape_cast %209 : vector<1x1x32xf32> to vector<1x32xf32>
    %211 = vector.broadcast %210 : vector<1x32xf32> to vector<16x32xf32>
    %212 = arith.addf %208, %211 : vector<16x32xf32>
    %213 = arith.addf %212, %3 : vector<16x32xf32>
    %c0_60 = arith.constant 0 : index
    %c0_61 = arith.constant 0 : index
    %c0_62 = arith.constant 0 : index
    %214 = vector.load %arg10[%c0_60, %c0_61, %c0_62] : memref<1x1x32xf32, #tpu.memory_space<vmem>>, vector<1x1x32xf32>
    %215 = vector.shape_cast %214 : vector<1x1x32xf32> to vector<1x32xf32>
    %c0_63 = arith.constant 0 : index
    %c0_64 = arith.constant 0 : index
    %c0_65 = arith.constant 0 : index
    %216 = vector.load %arg11[%c0_63, %c0_64, %c0_65] : memref<1x1x32xf32, #tpu.memory_space<vmem>>, vector<1x1x32xf32>
    %217 = vector.shape_cast %216 : vector<1x1x32xf32> to vector<1x32xf32>
    %cst_66 = arith.constant dense<0.000000e+00> : vector<16xf32>
    %218 = vector.multi_reduction <add>, %213, %cst_66 [1] : vector<16x32xf32> to vector<16xf32>
    %219 = vector.shape_cast %218 : vector<16xf32> to vector<16x1xf32>
    %cst_67 = arith.constant 3.200000e+01 : f32
    %220 = vector.broadcast %cst_67 : f32 to vector<16x1xf32>
    %221 = arith.divf %219, %220 : vector<16x1xf32>
    %222 = vector.broadcast %221 : vector<16x1xf32> to vector<16x32xf32>
    %223 = arith.subf %213, %222 : vector<16x32xf32>
    %224 = arith.mulf %223, %223 : vector<16x32xf32>
    %cst_68 = arith.constant dense<0.000000e+00> : vector<16xf32>
    %225 = vector.multi_reduction <add>, %224, %cst_68 [1] : vector<16x32xf32> to vector<16xf32>
    %226 = vector.shape_cast %225 : vector<16xf32> to vector<16x1xf32>
    %cst_69 = arith.constant 3.200000e+01 : f32
    %227 = vector.broadcast %cst_69 : f32 to vector<16x1xf32>
    %228 = arith.divf %226, %227 : vector<16x1xf32>
    %229 = vector.broadcast %221 : vector<16x1xf32> to vector<16x32xf32>
    %230 = arith.subf %213, %229 : vector<16x32xf32>
    %cst_70 = arith.constant 9.99999996E-13 : f32
    %231 = vector.broadcast %cst_70 : f32 to vector<16x1xf32>
    %232 = arith.addf %228, %231 : vector<16x1xf32>
    %233 = math.rsqrt %232 : vector<16x1xf32>
    %234 = vector.broadcast %233 : vector<16x1xf32> to vector<16x32xf32>
    %235 = arith.mulf %230, %234 : vector<16x32xf32>
    %236 = vector.broadcast %215 : vector<1x32xf32> to vector<16x32xf32>
    %237 = arith.mulf %235, %236 : vector<16x32xf32>
    %238 = vector.broadcast %217 : vector<1x32xf32> to vector<16x32xf32>
    %239 = arith.addf %237, %238 : vector<16x32xf32>
    %c0_71 = arith.constant 0 : index
    %c0_72 = arith.constant 0 : index
    %c0_73 = arith.constant 0 : index
    %240 = vector.load %arg12[%c0_71, %c0_72, %c0_73] : memref<1x32x64xf32, #tpu.memory_space<vmem>>, vector<1x32x64xf32>
    %241 = vector.shape_cast %240 : vector<1x32x64xf32> to vector<32x64xf32>
    %242 = arith.truncf %239 : vector<16x32xf32> to vector<16x32xbf16>
    %243 = arith.truncf %241 : vector<32x64xf32> to vector<32x64xbf16>
    %cst_74 = arith.constant dense<0.000000e+00> : vector<16x64xf32>
    %244 = tpu.matmul %242, %243, %cst_74 {dimension_numbers = #tpu.dot_dimension_numbers<[1], [0], [0], [1], [0, 0, 1, 1], [], []>} : vector<16x32xbf16>, vector<32x64xbf16>, vector<16x64xf32> -> vector<16x64xf32>
    %c0_75 = arith.constant 0 : index
    %c0_76 = arith.constant 0 : index
    %c0_77 = arith.constant 0 : index
    %245 = vector.load %arg13[%c0_75, %c0_76, %c0_77] : memref<1x1x64xf32, #tpu.memory_space<vmem>>, vector<1x1x64xf32>
    %246 = vector.shape_cast %245 : vector<1x1x64xf32> to vector<1x64xf32>
    %247 = vector.broadcast %246 : vector<1x64xf32> to vector<16x64xf32>
    %248 = arith.addf %244, %247 : vector<16x64xf32>
    %cst_78 = arith.constant 5.000000e-01 : f32
    %249 = vector.broadcast %cst_78 : f32 to vector<16x64xf32>
    %250 = arith.mulf %249, %248 : vector<16x64xf32>
    %cst_79 = arith.constant 4.471500e-02 : f32
    %251 = vector.broadcast %cst_79 : f32 to vector<16x64xf32>
    %252 = arith.mulf %251, %248 : vector<16x64xf32>
    %253 = arith.mulf %252, %248 : vector<16x64xf32>
    %254 = arith.mulf %253, %248 : vector<16x64xf32>
    %255 = arith.addf %248, %254 : vector<16x64xf32>
    %cst_80 = arith.constant 0.797884583 : f32
    %256 = vector.broadcast %cst_80 : f32 to vector<16x64xf32>
    %257 = arith.mulf %256, %255 : vector<16x64xf32>
    %258 = math.tanh %257 : vector<16x64xf32>
    %cst_81 = arith.constant 1.000000e+00 : f32
    %259 = vector.broadcast %cst_81 : f32 to vector<16x64xf32>
    %260 = arith.addf %259, %258 : vector<16x64xf32>
    %261 = arith.mulf %250, %260 : vector<16x64xf32>
    %c0_82 = arith.constant 0 : index
    %c0_83 = arith.constant 0 : index
    %c0_84 = arith.constant 0 : index
    %262 = vector.load %arg14[%c0_82, %c0_83, %c0_84] : memref<1x64x32xf32, #tpu.memory_space<vmem>>, vector<1x64x32xf32>
    %263 = vector.shape_cast %262 : vector<1x64x32xf32> to vector<64x32xf32>
    %264 = arith.truncf %261 : vector<16x64xf32> to vector<16x64xbf16>
    %265 = arith.truncf %263 : vector<64x32xf32> to vector<64x32xbf16>
    %cst_85 = arith.constant dense<0.000000e+00> : vector<16x32xf32>
    %266 = tpu.matmul %264, %265, %cst_85 {dimension_numbers = #tpu.dot_dimension_numbers<[1], [0], [0], [1], [0, 0, 1, 1], [], []>} : vector<16x64xbf16>, vector<64x32xbf16>, vector<16x32xf32> -> vector<16x32xf32>
    %c0_86 = arith.constant 0 : index
    %c0_87 = arith.constant 0 : index
    %c0_88 = arith.constant 0 : index
    %267 = vector.load %arg15[%c0_86, %c0_87, %c0_88] : memref<1x1x32xf32, #tpu.memory_space<vmem>>, vector<1x1x32xf32>
    %268 = vector.shape_cast %267 : vector<1x1x32xf32> to vector<1x32xf32>
    %269 = vector.broadcast %268 : vector<1x32xf32> to vector<16x32xf32>
    %270 = arith.addf %266, %269 : vector<16x32xf32>
    %271 = arith.addf %270, %239 : vector<16x32xf32>
    %c0_89 = arith.constant 0 : index
    %c0_90 = arith.constant 0 : index
    %c0_91 = arith.constant 0 : index
    %272 = vector.load %arg16[%c0_89, %c0_90, %c0_91] : memref<1x1x32xf32, #tpu.memory_space<vmem>>, vector<1x1x32xf32>
    %273 = vector.shape_cast %272 : vector<1x1x32xf32> to vector<1x32xf32>
    %c0_92 = arith.constant 0 : index
    %c0_93 = arith.constant 0 : index
    %c0_94 = arith.constant 0 : index
    %274 = vector.load %arg17[%c0_92, %c0_93, %c0_94] : memref<1x1x32xf32, #tpu.memory_space<vmem>>, vector<1x1x32xf32>
    %275 = vector.shape_cast %274 : vector<1x1x32xf32> to vector<1x32xf32>
    %cst_95 = arith.constant dense<0.000000e+00> : vector<16xf32>
    %276 = vector.multi_reduction <add>, %271, %cst_95 [1] : vector<16x32xf32> to vector<16xf32>
    %277 = vector.shape_cast %276 : vector<16xf32> to vector<16x1xf32>
    %cst_96 = arith.constant 3.200000e+01 : f32
    %278 = vector.broadcast %cst_96 : f32 to vector<16x1xf32>
    %279 = arith.divf %277, %278 : vector<16x1xf32>
    %280 = vector.broadcast %279 : vector<16x1xf32> to vector<16x32xf32>
    %281 = arith.subf %271, %280 : vector<16x32xf32>
    %282 = arith.mulf %281, %281 : vector<16x32xf32>
    %cst_97 = arith.constant dense<0.000000e+00> : vector<16xf32>
    %283 = vector.multi_reduction <add>, %282, %cst_97 [1] : vector<16x32xf32> to vector<16xf32>
    %284 = vector.shape_cast %283 : vector<16xf32> to vector<16x1xf32>
    %cst_98 = arith.constant 3.200000e+01 : f32
    %285 = vector.broadcast %cst_98 : f32 to vector<16x1xf32>
    %286 = arith.divf %284, %285 : vector<16x1xf32>
    %287 = vector.broadcast %279 : vector<16x1xf32> to vector<16x32xf32>
    %288 = arith.subf %271, %287 : vector<16x32xf32>
    %cst_99 = arith.constant 9.99999996E-13 : f32
    %289 = vector.broadcast %cst_99 : f32 to vector<16x1xf32>
    %290 = arith.addf %286, %289 : vector<16x1xf32>
    %291 = math.rsqrt %290 : vector<16x1xf32>
    %292 = vector.broadcast %291 : vector<16x1xf32> to vector<16x32xf32>
    %293 = arith.mulf %288, %292 : vector<16x32xf32>
    %294 = vector.broadcast %273 : vector<1x32xf32> to vector<16x32xf32>
    %295 = arith.mulf %293, %294 : vector<16x32xf32>
    %296 = vector.broadcast %275 : vector<1x32xf32> to vector<16x32xf32>
    %297 = arith.addf %295, %296 : vector<16x32xf32>
    %c0_100 = arith.constant 0 : index
    %c0_101 = arith.constant 0 : index
    %298 = vector.load %arg25[%c0_100, %c0_101] : memref<16x32xf32, #tpu.memory_space<vmem>>, vector<16x32xf32>
    tpu.vector_store %arg25[%c0_100, %c0_101], %297 {strides = array<i32>} : memref<16x32xf32, #tpu.memory_space<vmem>>, vector<16x32xf32>,
    %c1_i32 = arith.constant 1 : i32
    %299 = arith.cmpi eq, %arg0, %c1_i32 : i32
    %300 = arith.extui %299 : i1 to i32
    %c0_i32_102 = arith.constant 0 : i32
    %301 = arith.cmpi ne, %300, %c0_i32_102 : i32
    scf.if %301 {
      %302 = vector.extract_strided_slice %297 {offsets = [0, 0], sizes = [1, 32], strides = [1, 1]} : vector<16x32xf32> to vector<1x32xf32>
      %303 = vector.extract_strided_slice %297 {offsets = [8, 0], sizes = [1, 32], strides = [1, 1]} : vector<16x32xf32> to vector<1x32xf32>
      %304 = tpu.concatenate %302, %303 in 0 : vector<1x32xf32>, vector<1x32xf32> -> vector<2x32xf32>
      %c0_103 = arith.constant 0 : index
      %c0_104 = arith.constant 0 : index
      %305 = vector.load %arg18[%c0_103, %c0_104] : memref<32x32xf32, #tpu.memory_space<vmem>>, vector<32x32xf32>
      %306 = arith.truncf %304 : vector<2x32xf32> to vector<2x32xbf16>
      %307 = arith.truncf %305 : vector<32x32xf32> to vector<32x32xbf16>
      %cst_105 = arith.constant dense<0.000000e+00> : vector<2x32xf32>
      %308 = tpu.matmul %306, %307, %cst_105 {dimension_numbers = #tpu.dot_dimension_numbers<[1], [0], [0], [1], [0, 0, 1, 1], [], []>} : vector<2x32xbf16>, vector<32x32xbf16>, vector<2x32xf32> -> vector<2x32xf32>
      %c0_106 = arith.constant 0 : index
      %c0_107 = arith.constant 0 : index
      %309 = vector.load %arg19[%c0_106, %c0_107] : memref<1x32xf32, #tpu.memory_space<vmem>>, vector<1x32xf32>
      %310 = vector.broadcast %309 : vector<1x32xf32> to vector<2x32xf32>
      %311 = arith.addf %308, %310 : vector<2x32xf32>
      %312 = math.tanh %311 : vector<2x32xf32>
      %c0_108 = arith.constant 0 : index
      %c0_109 = arith.constant 0 : index
      %313 = vector.load %arg20[%c0_108, %c0_109] : memref<32x2xf32, #tpu.memory_space<vmem>>, vector<32x2xf32>
      %314 = arith.truncf %312 : vector<2x32xf32> to vector<2x32xbf16>
      %315 = arith.truncf %313 : vector<32x2xf32> to vector<32x2xbf16>
      %cst_110 = arith.constant dense<0.000000e+00> : vector<2x2xf32>
      %316 = tpu.matmul %314, %315, %cst_110 {dimension_numbers = #tpu.dot_dimension_numbers<[1], [0], [0], [1], [0, 0, 1, 1], [], []>} : vector<2x32xbf16>, vector<32x2xbf16>, vector<2x2xf32> -> vector<2x2xf32>
      %c0_111 = arith.constant 0 : index
      %c0_112 = arith.constant 0 : index
      %317 = vector.load %arg21[%c0_111, %c0_112] : memref<1x2xf32, #tpu.memory_space<vmem>>, vector<1x2xf32>
      %318 = vector.broadcast %317 : vector<1x2xf32> to vector<2x2xf32>
      %319 = arith.addf %316, %318 : vector<2x2xf32>
      %c0_113 = arith.constant 0 : index
      %c0_114 = arith.constant 0 : index
      %320 = vector.load %arg22[%c0_113, %c0_114] : memref<2x2xf32, #tpu.memory_space<vmem>>, vector<2x2xf32>
      tpu.vector_store %arg22[%c0_113, %c0_114], %319 {strides = array<i32>} : memref<2x2xf32, #tpu.memory_space<vmem>>, vector<2x2xf32>,
      %cst_115 = arith.constant dense<0xFF800000> : vector<2xf32>
      %321 = vector.multi_reduction <maximumf>, %319, %cst_115 [1] : vector<2x2xf32> to vector<2xf32>
      %322 = vector.shape_cast %321 : vector<2xf32> to vector<2x1xf32>
      %323 = vector.broadcast %322 : vector<2x1xf32> to vector<2x2xf32>
      %324 = arith.subf %319, %323 : vector<2x2xf32>
      %325 = math.exp %324 : vector<2x2xf32>
      %cst_116 = arith.constant dense<0.000000e+00> : vector<2xf32>
      %326 = vector.multi_reduction <add>, %325, %cst_116 [1] : vector<2x2xf32> to vector<2xf32>
      %327 = vector.shape_cast %326 : vector<2xf32> to vector<2x1xf32>
      %328 = vector.broadcast %327 : vector<2x1xf32> to vector<2x2xf32>
      %329 = arith.divf %325, %328 : vector<2x2xf32>
      %c0_117 = arith.constant 0 : index
      %c0_118 = arith.constant 0 : index
      %330 = vector.load %arg23[%c0_117, %c0_118] : memref<2x2xf32, #tpu.memory_space<vmem>>, vector<2x2xf32>
      tpu.vector_store %arg23[%c0_117, %c0_118], %329 {strides = array<i32>} : memref<2x2xf32, #tpu.memory_space<vmem>>, vector<2x2xf32>,
      %331 = vector.broadcast %322 : vector<2x1xf32> to vector<2x2xf32>
      %332 = arith.subf %319, %331 : vector<2x2xf32>
      %333 = math.log %327 : vector<2x1xf32>
      %334 = vector.broadcast %333 : vector<2x1xf32> to vector<2x2xf32>
      %335 = arith.subf %332, %334 : vector<2x2xf32>
      %c0_119 = arith.constant 0 : index
      %c0_120 = arith.constant 0 : index
      %336 = vector.load %arg3[%c0_119, %c0_120] : memref<2x2xf32, #tpu.memory_space<vmem>>, vector<2x2xf32>
      %337 = arith.mulf %336, %335 : vector<2x2xf32>
      %cst_121 = arith.constant dense<0.000000e+00> : vector<2xf32>
      %338 = vector.multi_reduction <add>, %337, %cst_121 [1] : vector<2x2xf32> to vector<2xf32>
      %339 = vector.shape_cast %338 : vector<2xf32> to vector<2x1xf32>
      %cst_122 = arith.constant 0.000000e+00 : f32
      %340 = vector.broadcast %cst_122 : f32 to vector<2x1xf32>
      %341 = arith.subf %340, %339 : vector<2x1xf32>
      %cst_123 = arith.constant dense<0.000000e+00> : vector<1xf32>
      %342 = vector.multi_reduction <add>, %341, %cst_123 [0] : vector<2x1xf32> to vector<1xf32>
      %343 = vector.shape_cast %342 : vector<1xf32> to vector<1x1xf32>
      %cst_124 = arith.constant 2.000000e+00 : f32
      %344 = vector.broadcast %cst_124 : f32 to vector<1x1xf32>
      %345 = arith.divf %343, %344 : vector<1x1xf32>
      %c0_125 = arith.constant 0 : index
      %c0_126 = arith.constant 0 : index
      %346 = vector.load %arg24[%c0_125, %c0_126] : memref<1x1xf32, #tpu.memory_space<vmem>>, vector<1x1xf32>
      tpu.vector_store %arg24[%c0_125, %c0_126], %345 {strides = array<i32>} : memref<1x1xf32, #tpu.memory_space<vmem>>, vector<1x1xf32>,
    } else {
    }
    return
  }
  func.func @transform_0(%arg0: i32) -> (i32, i32) {
    %c0_i32 = arith.constant 0 : i32
    %c0_i32_0 = arith.constant 0 : i32
    %c0_i32_1 = arith.constant 0 : i32
    return %c0_i32, %c0_i32_0 : i32, i32
  }
  func.func @transform_1(%arg0: i32) -> (i32, i32, i32) {
    %c0_i32 = arith.constant 0 : i32
    %c0_i32_0 = arith.constant 0 : i32
    %c0_i32_1 = arith.constant 0 : i32
    %c0_i32_2 = arith.constant 0 : i32
    return %c0_i32, %c0_i32_0, %c0_i32_1 : i32, i32, i32
  }
  func.func @transform_2(%arg0: i32) -> (i32, i32) {
    %c0_i32 = arith.constant 0 : i32
    %c0_i32_0 = arith.constant 0 : i32
    %c0_i32_1 = arith.constant 0 : i32
    return %c0_i32, %c0_i32_0 : i32, i32
  }
  func.func @transform_3(%arg0: i32) -> (i32, i32) {
    %c0_i32 = arith.constant 0 : i32
    %c0_i32_0 = arith.constant 0 : i32
    %c0_i32_1 = arith.constant 0 : i32
    return %c0_i32, %c0_i32_0 : i32, i32
  }
  func.func @transform_4(%arg0: i32) -> (i32, i32) {
    %c0_i32 = arith.constant 0 : i32
    %c0_i32_0 = arith.constant 0 : i32
    %c0_i32_1 = arith.constant 0 : i32
    return %c0_i32, %c0_i32_0 : i32, i32
  }
  func.func @transform_5(%arg0: i32) -> (i32, i32, i32) {
    %c0_i32 = arith.constant 0 : i32
    %c0_i32_0 = arith.constant 0 : i32
    %c0_i32_1 = arith.constant 0 : i32
    return %arg0, %c0_i32, %c0_i32_0 : i32, i32, i32
  }
  func.func @transform_6(%arg0: i32) -> (i32, i32, i32) {
    %c0_i32 = arith.constant 0 : i32
    %c0_i32_0 = arith.constant 0 : i32
    %c0_i32_1 = arith.constant 0 : i32
    return %arg0, %c0_i32, %c0_i32_0 : i32, i32, i32
  }
  func.func @transform_7(%arg0: i32) -> (i32, i32, i32) {
    %c0_i32 = arith.constant 0 : i32
    %c0_i32_0 = arith.constant 0 : i32
    %c0_i32_1 = arith.constant 0 : i32
    return %arg0, %c0_i32, %c0_i32_0 : i32, i32, i32
  }
  func.func @transform_8(%arg0: i32) -> (i32, i32, i32) {
    %c0_i32 = arith.constant 0 : i32
    %c0_i32_0 = arith.constant 0 : i32
    %c0_i32_1 = arith.constant 0 : i32
    return %arg0, %c0_i32, %c0_i32_0 : i32, i32, i32
  }
  func.func @transform_9(%arg0: i32) -> (i32, i32, i32) {
    %c0_i32 = arith.constant 0 : i32
    %c0_i32_0 = arith.constant 0 : i32
    %c0_i32_1 = arith.constant 0 : i32
    return %arg0, %c0_i32, %c0_i32_0 : i32, i32, i32
  }
  func.func @transform_10(%arg0: i32) -> (i32, i32, i32) {
    %c0_i32 = arith.constant 0 : i32
    %c0_i32_0 = arith.constant 0 : i32
    %c0_i32_1 = arith.constant 0 : i32
    return %arg0, %c0_i32, %c0_i32_0 : i32, i32, i32
  }
  func.func @transform_11(%arg0: i32) -> (i32, i32, i32) {
    %c0_i32 = arith.constant 0 : i32
    %c0_i32_0 = arith.constant 0 : i32
    %c0_i32_1 = arith.constant 0 : i32
    return %arg0, %c0_i32, %c0_i32_0 : i32, i32, i32
  }
  func.func @transform_12(%arg0: i32) -> (i32, i32, i32) {
    %c0_i32 = arith.constant 0 : i32
    %c0_i32_0 = arith.constant 0 : i32
    %c0_i32_1 = arith.constant 0 : i32
    return %arg0, %c0_i32, %c0_i32_0 : i32, i32, i32
  }
  func.func @transform_13(%arg0: i32) -> (i32, i32, i32) {
    %c0_i32 = arith.constant 0 : i32
    %c0_i32_0 = arith.constant 0 : i32
    %c0_i32_1 = arith.constant 0 : i32
    return %arg0, %c0_i32, %c0_i32_0 : i32, i32, i32
  }
  func.func @transform_14(%arg0: i32) -> (i32, i32, i32) {
    %c0_i32 = arith.constant 0 : i32
    %c0_i32_0 = arith.constant 0 : i32
    %c0_i32_1 = arith.constant 0 : i32
    return %arg0, %c0_i32, %c0_i32_0 : i32, i32, i32
  }
  func.func @transform_15(%arg0: i32) -> (i32, i32, i32) {
    %c0_i32 = arith.constant 0 : i32
    %c0_i32_0 = arith.constant 0 : i32
    %c0_i32_1 = arith.constant 0 : i32
    return %arg0, %c0_i32, %c0_i32_0 : i32, i32, i32
  }
  func.func @transform_16(%arg0: i32) -> (i32, i32, i32) {
    %c0_i32 = arith.constant 0 : i32
    %c0_i32_0 = arith.constant 0 : i32
    %c0_i32_1 = arith.constant 0 : i32
    return %arg0, %c0_i32, %c0_i32_0 : i32, i32, i32
  }
  func.func @transform_17(%arg0: i32) -> (i32, i32) {
    %c0_i32 = arith.constant 0 : i32
    %c0_i32_0 = arith.constant 0 : i32
    %c0_i32_1 = arith.constant 0 : i32
    return %c0_i32, %c0_i32_0 : i32, i32
  }
  func.func @transform_18(%arg0: i32) -> (i32, i32) {
    %c0_i32 = arith.constant 0 : i32
    %c0_i32_0 = arith.constant 0 : i32
    %c0_i32_1 = arith.constant 0 : i32
    return %c0_i32, %c0_i32_0 : i32, i32
  }
  func.func @transform_19(%arg0: i32) -> (i32, i32) {
    %c0_i32 = arith.constant 0 : i32
    %c0_i32_0 = arith.constant 0 : i32
    %c0_i32_1 = arith.constant 0 : i32
    return %c0_i32, %c0_i32_0 : i32, i32
  }
  func.func @transform_20(%arg0: i32) -> (i32, i32) {
    %c0_i32 = arith.constant 0 : i32
    %c0_i32_0 = arith.constant 0 : i32
    %c0_i32_1 = arith.constant 0 : i32
    return %c0_i32, %c0_i32_0 : i32, i32
  }
  func.func @transform_21(%arg0: i32) -> (i32, i32) {
    %c0_i32 = arith.constant 0 : i32
    %c0_i32_0 = arith.constant 0 : i32
    %c0_i32_1 = arith.constant 0 : i32
    return %c0_i32, %c0_i32_0 : i32, i32
  }
  func.func @transform_22(%arg0: i32) -> (i32, i32) {
    %c0_i32 = arith.constant 0 : i32
    %c0_i32_0 = arith.constant 0 : i32
    %c0_i32_1 = arith.constant 0 : i32
    return %c0_i32, %c0_i32_0 : i32, i32
  }
  func.func @transform_23(%arg0: i32) -> (i32, i32) {
    %c0_i32 = arith.constant 0 : i32
    %c0_i32_0 = arith.constant 0 : i32
    %c0_i32_1 = arith.constant 0 : i32
    return %c0_i32, %c0_i32_0 : i32, i32
  }
}

</mosaic_0001>

<bundles_post_ra>
// kernel: bert_forward.1
= control target key start
LH: loop header
LB: loop body
LE: loop exit
PB: predicated region body
PF: predicated region fallthrough
CT: control target
= control target key end

     0   :  { %s3673_s0 = inlined_call_operand.vmem [shape: f32[16,32], index: 0, kind: input, shape index: {}]   ;;  %s3674_s1 = inlined_call_operand.vmem [shape: f32[2,1,8], index: 1, kind: input, shape index: {}]   ;;  %s3675_s2 = inlined_call_operand.vmem [shape: f32[2,2], index: 2, kind: input, shape index: {}]   ;;  %s3676_s3 = inlined_call_operand.vmem [shape: f32[1,32], index: 3, kind: input, shape index: {}]   ;;  %s3677_s4 = inlined_call_operand.vmem [shape: f32[1,32], index: 4, kind: input, shape index: {}]   ;;  %s3678_s5 = inlined_call_operand.vmem [shape: f32[2,32,96], index: 5, kind: input, shape index: {}]   ;;  %s3679_s6 = inlined_call_operand.vmem [shape: f32[2,1,96], index: 6, kind: input, shape index: {}]   ;;  %s3680_s7 = inlined_call_operand.vmem [shape: f32[2,32,32], index: 7, kind: input, shape index: {}]   ;;  %s3681_s8 = inlined_call_operand.vmem [shape: f32[2,1,32], index: 8, kind: input, shape index: {}]   ;;  %s3682_s9 = inlined_call_operand.vmem [shape: f32[2,1,32], index: 9, kind: input, shape index: {}]   ;;  %s3683_s10 = inlined_call_operand.vmem [shape: f32[2,1,32], index: 10, kind: input, shape index: {}]   ;;  %s3684_s11 = inlined_call_operand.vmem [shape: f32[2,32,64], index: 11, kind: input, shape index: {}]   ;;  %s3685_s12 = inlined_call_operand.vmem [shape: f32[2,1,64], index: 12, kind: input, shape index: {}]   ;;  %s3686_s13 = inlined_call_operand.vmem [shape: f32[2,64,32], index: 13, kind: input, shape index: {}]   ;;  %s3687_s14 = inlined_call_operand.vmem [shape: f32[2,1,32], index: 14, kind: input, shape index: {}]   ;;  %s3688_s15 = inlined_call_operand.vmem [shape: f32[2,1,32], index: 15, kind: input, shape index: {}]   ;;  %s3689_s16 = inlined_call_operand.vmem [shape: f32[2,1,32], index: 16, kind: input, shape index: {}]   ;;  %s3690_s17 = inlined_call_operand.vmem [shape: f32[32,32], index: 17, kind: input, shape index: {}]   ;;  %s3691_s18 = inlined_call_operand.vmem [shape: f32[1,32], index: 18, kind: input, shape index: {}]   ;;  %s3692_s19 = inlined_call_operand.vmem [shape: f32[32,2], index: 19, kind: input, shape index: {}]   ;;  %s3693_s20 = inlined_call_operand.vmem [shape: f32[1,2], index: 20, kind: input, shape index: {}]   ;;  %s3694_s21 = inlined_call_operand.hbm [shape: f32[2,2], index: 21, kind: output, shape index: {0}]   ;;  %s3695_s22 = inlined_call_operand.hbm [shape: f32[2,2], index: 22, kind: output, shape index: {1}]   ;;  %s3696_s23 = inlined_call_operand.hbm [shape: f32[1,1], index: 23, kind: output, shape index: {2}]  }
   0x1   :  { %3704 = sst [smem:[#allocation11_spill]] %s3673_s0 }
   0x2   :  { %3705 = sst [smem:[#allocation12_spill]] %s3674_s1 }
   0x3   :  { %3706 = sst [smem:[#allocation13_spill]] %s3675_s2 }
   0x4   :  { %3707 = sst [smem:[#allocation14_spill]] %s3676_s3 }
   0x5   :  { %3708 = sst [smem:[#allocation15_spill]] %s3677_s4 }
   0x6   :  { %3709 = sst [smem:[#allocation16_spill]] %s3678_s5 }
   0x7   :  { %3710 = sst [smem:[#allocation17_spill]] %s3679_s6 }
   0x8   :  { %3711 = sst [smem:[#allocation18_spill]] %s3680_s7 }
   0x9   :  { %3712 = sst [smem:[#allocation19_spill]] %s3691_s18 }
   0xa   :  { %3713 = sst [smem:[#allocation20_spill]] %s3692_s19 }
   0xb   :  { %3714 = sst [smem:[#allocation21_spill]] %s3693_s20 }
   0xc   :  { %3715 = sst [smem:[#allocation22_spill]] %s3694_s21 }
   0xd   :  { %3716 = sst [smem:[#allocation23_spill]] %s3695_s22 }
   0xe   :  { %3717 = sst [smem:[#allocation24_spill]] %s3696_s23 }
   0xf   :  { %29 = vsyncpa [#allocation4], 0 }
  0x10   :  { %30 = vsyncpa [#allocation6], 0  ;;  %s3192_s4 = smov 0  }
  0x11 LB: > { %3718 = sst [smem:[#allocation10_spill]] %s3049_s4  ;;  %s3198_s30 = sadd.s32 4294967295, %s3049_s4   ;;  %s3049_s4 = sphi %s3192_s4, %s36_s4  }
  0x12   : > { %p2579_p0 = scmp.ge.s32.totalorder %s3049_s4, 1  ;;  %p723_p1 = scmp.lt.s32.totalorder %s3049_s4, 3 }
  0x14   : > { %p724_p2 = pnand %p2579_p0, %p723_p1 }
  0x15   : > { %p821_p3 = scmp.lt.s32.totalorder (!%p724_p2), %s3198_s30, 1  ;;  %s3720_s7 = sld [smem:[#allocation16_spill]] (!%p724_p2) }
  0x16   : > { %727 = sbr.rel (%p724_p2) target bundleno = 4002 (0xfa2), region = 104  ;;  %s3721_s0 = sld [smem:[#allocation18_spill]] (!%p724_p2) }
  0x17   : > { %p2588_p4 = scmp.ne.s32.totalorder (!%p724_p2), %s3198_s30, 0 }
  0x1d   : > { %s3204_s24 = scalar_select %p821_p3, %s3198_s30, 1 }
  0x1e   : > { %869 = sbr.rel (%p2588_p4) target bundleno = 355 (0x163), region = 108  ;;  %s3722_s21 = sld [smem:[#allocation11_spill]] (!%p2588_p4)  ;;  %vm874_vm0 = vcmask (!%p2588_p4), 261120  }
  0x1f   : > { %s2635_s25 = sshll.u32 %s3204_s24, 5  ;;  %s2638_s2 = sshll.u32 %s3204_s24, 6 }
  0x20   : > { %s3214_s28 = scalar_lea.vmem %s3720_s7, %s2635_s25  ;;  %s3219_s4 = scalar_lea.vmem %s3721_s0, %s2635_s25 }
  0x21   : > { %s3236_s7 = scalar_lea.vmem %s3684_s11, %s2635_s25  ;;  %s850_s0 = scalar_lea.vmem %s3685_s12, %s3204_s24 }
  0x22   : > { %s3246_s22 = scalar_lea.vmem %s3686_s13, %s2638_s2  ;;  %s858_s5 = scalar_lea.vmem %s3687_s14, %s3204_s24 }
  0x23   : > { %s861_s6 = scalar_lea.vmem %s3688_s15, %s3204_s24  ;;  %s864_s19 = scalar_lea.vmem %s3689_s16, %s3204_s24 }
  0x24   : > { %v870_v0 = vld [vmem:[%s3722_s21] sm:$0xff] (!%p2588_p4)  ;;  %v871_v1 = vld [vmem:[%s3722_s21 + $0x8] sm:$0xff] (!%p2588_p4)  ;;  %s3723_s20 = sld [smem:[#allocation14_spill]] (!%p2588_p4)  ;;  %s3724_s27 = sld [smem:[#allocation15_spill]] (!%p2588_p4) }
  0x25   : > { %v875_v2 = vsel %vm874_vm0, %v870_v0, 0.0  ;;  %v878_v3 = vsel %vm874_vm0, %v871_v1, 0.0 }
  0x26   : > { %876 = vadd.xlane.f32.xlu0 %v875_v2 }
  0x2a   : > { %879 = vadd.xlane.f32.xlu0 %v878_v3  ;;  %v2589_v21 = vld [vmem:[%s3723_s20] ss:$0 sm:$0xff] }
  0x2b   : > { %v2590_v23 = vld [vmem:[%s3724_s27] ss:$0 sm:$0xff] }
  0xb3   : > { %v877_v4 = vpop.xlane.xlu0 %876 }
  0xb4   : > { %v882_v5 = vmul.f32 0.03125, %v877_v4 }
  0xb6   : > { %v884_v6 = vsub.f32 %v870_v0, %v882_v5 }
  0xb7   : > { %v880_v7 = vpop.xlane.xlu0 %879 }
  0xb8   : > { %v883_v8 = vmul.f32 0.03125, %v880_v7  ;;  %v886_v9 = vmul.f32 %v884_v6, %v884_v6 }
  0xba   : > { %v885_v10 = vsub.f32 %v871_v1, %v883_v8  ;;  %v888_v11 = vsel %vm874_vm0, %v886_v9, 0.0 }
  0xbb   : > { %889 = vadd.xlane.f32.xlu1 %v888_v11 }
  0xbc   : > { %v887_v12 = vmul.f32 %v885_v10, %v885_v10 }
  0xbe   : > { %v891_v13 = vsel %vm874_vm0, %v887_v12, 0.0 }
  0xbf   : > { %892 = vadd.xlane.f32.xlu1 %v891_v13 }
 0x148   : > { %v890_v14 = vpop.xlane.xlu1 %889 }
 0x149   : > { %v894_v15 = vmul.f32 0.03125, %v890_v14 }
 0x14b   : > { %v896_v16 = vadd.f32 1e-12, %v894_v15 }
 0x14c   : > { %v893_v17 = vpop.xlane.xlu1 %892 }
 0x14d   : > { %2886 = vrsqrt.f32 %v896_v16  ;;  %v895_v18 = vmul.f32 0.03125, %v893_v17 }
 0x14f   : > { %v897_v19 = vadd.f32 1e-12, %v895_v18 }
 0x151   : > { %2888 = vrsqrt.f32 %v897_v19 }
 0x157   : > { %v2887_v20 = vpop.eup %2886 }
 0x158   : > { %v900_v22 = vmul.f32 %v2887_v20, %v884_v6 }
 0x15a   : > { %v908_v24 = vmul.f32 %v2589_v21, %v900_v22 }
 0x15b   : > { %v2889_v25 = vpop.eup %2888 }
 0x15c   : > { %v916_v26 = vadd.f32 %v2590_v23, %v908_v24  ;;  %v901_v27 = vmul.f32 %v2889_v25, %v885_v10 }
 0x15e   : > { %918 = vst.msk [vmem:[#allocation2] sm:$0xff] %vm874_vm0, %v916_v26  ;;  %v909_v28 = vmul.f32 %v2589_v21, %v901_v27 }
 0x160   : > { %v917_v29 = vadd.f32 %v2590_v23, %v909_v28 }
 0x162   : > { %919 = vst.msk [vmem:[#allocation2 + $0x8] sm:$0xff] %vm874_vm0, %v917_v29 }
 0x163 PF: > { %v922_v30 = vld [vmem:[%s3214_s28] sm:$0xff]  ;;  %v923_v31 = vld [vmem:[%s3214_s28 + $0x8] sm:$0xff]  ;;  %v924_v32 = vld [vmem:[%s3214_s28 + $0x10] sm:$0xff]  ;;  %v3051_v33 = vmov 0.0   ;;  %vm3052_vm1 = vmmov 0   ;;  %vm936_vm2 = vcmask 261120  }
 0x164   : > { %2691 = vmatprep.subr.bf16.mxu0 %v3051_v33  ;;  %v927_v34 = vpack.c.bf16 %v923_v31, %v922_v30  ;;  %v925_v35 = vld [vmem:[%s3214_s28 + $0x18] sm:$0xff]  ;;  %2695 = vmatprep.mubr.msk.bf16.mxu0 %vm3052_vm1, %v3051_v33  ;;  %s3725_s3 = sld [smem:[#allocation17_spill]]  ;;  %s3053_s23 = smov 120   ;;  %vm986_vm3 = vcmask 64512   ;;  %vm1058_vm4 = vcmask 1043456   ;;  %vm1451_vm5 = vcmask 130048  }
 0x165   : > { %2699 = vmatprep.subr.bf16.mxu1 %v3051_v33  ;;  %2701 = vmatprep.mubr.msk.bf16.mxu1 %vm3052_vm1, %v3051_v33  ;;  %v928_v36 = vpack.c.bf16 %v925_v35, %v924_v32  ;;  %v3289_v37 = vld [vmem:[#allocation2] sm:$0xff]  ;;  %s3054_s26 = smov 96   ;;  %s3055_s18 = smov 80   ;;  %vm1453_vm6 = vcmask 195584   ;;  %vm2127_vm7 = vcmask 523264  }
 0x166   : > { %2692 = vmatpush3.bf16.msra.mxu0 %v927_v34  ;;  %s3056_s20 = smov 88   ;;  %s3057_s1 = smov 72  }
 0x167   : > { %2693 = vmatprep.subr.bf16.mxu0 %v3051_v33  ;;  %s3058_s25 = smov 112   ;;  %s3059_s27 = smov 104  }
 0x168   : > { %s3066_s28 = smov 24   ;;  %p2622_p5 = scmp.ne.s32.totalorder %s3198_s30, 1 }
 0x169   : > { %v3291_v38 = vld [vmem:[#allocation2 + $0x8] sm:$0xff]  ;;  %vm3068_vm8 = vmmov (!%p2622_p5), 0   ;;  %vm2227_vm9 = vcmask (!%p2622_p5), 1040384   ;;  %vm2344_vm10 = vcmask (!%p2622_p5), 9216   ;;  %vm2367_vm11 = vcmask (!%p2622_p5), 1041408  }
 0x16a   : > { %v926_v39 = vpack.c.bf16 %v3291_v38, %v3289_v37  ;;  %2694 = vmatpush3.bf16.msra.mxu0 %v928_v36  ;;  %s3726_s2 = scalar_lea.vmem %s3725_s3, %s3204_s24  ;;  %s3727_s3 = sld [smem:[#allocation12_spill]]  ;;  %vm2377_vm12 = vcmask (!%p2622_p5), 0  }
 0x16b   : > { %2705 = vmatprep.subr.bf16.mxu0 %v3051_v33  ;;  %v2591_v40 = vld [vmem:[%s3726_s2] ss:$0 sm:$0xff]  ;;  %s3728_s2 = scalar_lea.vmem %s3681_s8, %s3204_s24 }
 0x16d   : > { %2696 = vmatmul.mubr.msk.bf16.vlgmr.msra.gmra.mrb[0].mxu0 %vm936_vm2, %v926_v39 }
 0x16e   : > { %2707 = vmatprep.mubr.msk.bf16.mxu0 %vm3052_vm1, %v3051_v33 }
 0x170   : > { %v2594_v8 = vld [vmem:[%s3727_s3] ss:$0 sm:$0xff] }
 0x240   : > { %v974_v41 = vpop.f32.mrb[0].mxu0 }
 0x241   : > { %v975_v42 = vadd.f32 %v2591_v40, %v974_v41  ;;  %v2697_v43 = vpop.f32.mrb[1].mxu0 }
 0x242   : > { %v977_v44 = vpop.f32.mrb[2].mxu0 }
 0x243   : > { %v3305_v45 = vpack.c.bf16 %v975_v42, %v975_v42  ;;  %v2698_v46 = vpop.f32.mrb[3].mxu0  ;;  %v978_v47 = vadd.f32 %v2591_v40, %v977_v44  ;;  %v2604_v40 = vld [vmem:[%s3727_s3 + $0x1] ss:$0 sm:$0xff] }
 0x245   : > { %1102 = vrot.lane.b32.xlu1 %v3305_v45, %s3053_s23  ;;  %984 = vrot.lane.b32.xlu0 %v3305_v45, %s3054_s26  ;;  %v3313_v48 = vpack.c.bf16 %v978_v47, %v978_v47 }
 0x249   : > { %1216 = vrot.lane.b32.xlu1 %v3305_v45, %s3055_s18  ;;  %1104 = vrot.lane.b32.xlu0 %v3305_v45, %s3056_s20 }
 0x24d   : > { %1328 = vrot.lane.b32.xlu1 %v3305_v45, %s3057_s1  ;;  %1214 = vrot.lane.b32.xlu0 %v3305_v45, %s3058_s25 }
 0x251   : > { %1326 = vrot.lane.b32.xlu0 %v3305_v45, %s3059_s27  ;;  %1459 = vrot.lane.b32.xlu1 %v3313_v48, %s3054_s26  ;;  %s3060_s26 = smov 56  }
 0x255   : > { %1577 = vrot.lane.b32.xlu0 %v3313_v48, %s3056_s20  ;;  %1575 = vrot.lane.b32.xlu1 %v3313_v48, %s3053_s23  ;;  %s3062_s20 = smov 48  }
 0x259   : > { %1689 = vrot.lane.b32.xlu0 %v3313_v48, %s3055_s18  ;;  %1687 = vrot.lane.b32.xlu1 %v3313_v48, %s3058_s25  ;;  %s3061_s18 = smov 64   ;;  %s3064_s25 = smov 8  }
 0x25d   : > { %1801 = vrot.lane.b32.xlu0 %v3313_v48, %s3057_s1  ;;  %1799 = vrot.lane.b32.xlu1 %v3313_v48, %s3059_s27  ;;  %s3063_s1 = smov 40   ;;  %s3065_s27 = smov 16  }
 0x2b7   : > { %v985_v49 = vpop.permute.xlu0 %984  ;;  %v1103_v52 = vpop.permute.xlu1 %1102 }
 0x2b8   : > { %v991_v50 = vsel %vm986_vm3, %v985_v49, 0 }
 0x2b9   : > { %2700 = vmatpush3.bf16.xpose.msra.mxu1 %v991_v50 }
 0x2ba   : > { %2711 = vmatprep.subr.bf16.mxu1 %v3051_v33 }
 0x2bb   : > { %v1105_v51 = vpop.permute.xlu0 %1104  ;;  %v1217_v54 = vpop.permute.xlu1 %1216 }
 0x2bc   : > { %v1110_v53 = vsel %vm986_vm3, %v1105_v51, 0  ;;  %v1222_v55 = vsel %vm986_vm3, %v1217_v54, 0 }
 0x2bf   : > { %v1329_v56 = vpop.permute.xlu1 %1328  ;;  %v1215_v57 = vpop.permute.xlu0 %1214 }
 0x2c0   : > { %2702 = vmatmul.mubr.msk.bf16.vlgmr.msra.gmra.mrb[0].mxu1 %vm986_vm3, %v3305_v45  ;;  %v1334_v58 = vsel %vm986_vm3, %v1329_v56, 0 }
 0x2c1   : > { %2712 = vmatpush3.bf16.xpose.msra.mxu1 %v1110_v53  ;;  %2713 = vmatprep.mubr.msk.bf16.mxu1 %vm3052_vm1, %v3051_v33 }
 0x2c2   : > { %2723 = vmatprep.subr.bf16.mxu1 %v3051_v33 }
 0x2c3   : > { %v1460_v59 = vpop.permute.xlu1 %1459  ;;  %v1327_v60 = vpop.permute.xlu0 %1326 }
 0x2c4   : > { %v1465_v61 = vsel %vm986_vm3, %v1460_v59, 0 }
 0x2c7   : > { %v1578_v62 = vpop.permute.xlu0 %1577  ;;  %v1576_v1 = vpop.permute.xlu1 %1575 }
 0x2c8   : > { %2714 = vmatmul.mubr.msk.bf16.vlgmr.msra.gmra.mrb[4].mxu1 %vm986_vm3, %v1103_v52  ;;  %v1583_v63 = vsel %vm986_vm3, %v1578_v62, 0 }
 0x2c9   : > { %2724 = vmatpush3.bf16.xpose.msra.mxu1 %v1222_v55  ;;  %2725 = vmatprep.mubr.msk.bf16.mxu1 %vm3052_vm1, %v3051_v33 }
 0x2ca   : > { %2735 = vmatprep.subr.bf16.mxu1 %v3051_v33 }
 0x2cb   : > { %v1690_v0 = vpop.permute.xlu0 %1689  ;;  %v1688_v4 = vpop.permute.xlu1 %1687 }
 0x2cc   : > { %v1695_v2 = vsel %vm986_vm3, %v1690_v0, 0 }
 0x2cf   : > { %v1802_v3 = vpop.permute.xlu0 %1801  ;;  %v1800_v6 = vpop.permute.xlu1 %1799 }
 0x2d0   : > { %2726 = vmatmul.mubr.msk.bf16.vlgmr.msra.gmra.mrb[8].mxu1 %vm986_vm3, %v1215_v57  ;;  %v1807_v5 = vsel %vm986_vm3, %v1802_v3, 0 }
 0x2d1   : > { %2736 = vmatpush3.bf16.xpose.msra.mxu1 %v1334_v58  ;;  %2737 = vmatprep.mubr.msk.bf16.mxu1 %vm3052_vm1, %v3051_v33 }
 0x2d2   : > { %2747 = vmatprep.subr.bf16.mxu1 %v3051_v33 }
 0x2d8   : > { %2738 = vmatmul.mubr.msk.bf16.vlgmr.msra.gmra.mrb[12].mxu1 %vm986_vm3, %v1327_v60 }
 0x2d9   : > { %2748 = vmatpush3.bf16.xpose.msra.mxu1 %v1465_v61  ;;  %2749 = vmatprep.mubr.msk.bf16.mxu1 %vm3052_vm1, %v3051_v33 }
 0x2da   : > { %2759 = vmatprep.subr.bf16.mxu1 %v3051_v33 }
 0x2e0   : > { %2750 = vmatmul.mubr.msk.bf16.vlgmr.msra.gmra.mrb[16].mxu1 %vm986_vm3, %v3313_v48 }
 0x2e1   : > { %2760 = vmatpush3.bf16.xpose.msra.mxu1 %v1583_v63  ;;  %2761 = vmatprep.mubr.msk.bf16.mxu1 %vm3052_vm1, %v3051_v33 }
 0x2e2   : > { %2771 = vmatprep.subr.bf16.mxu1 %v3051_v33 }
 0x2e8   : > { %2762 = vmatmul.mubr.msk.bf16.vlgmr.msra.gmra.mrb[20].mxu1 %vm986_vm3, %v1576_v1 }
 0x2e9   : > { %2772 = vmatpush3.bf16.xpose.msra.mxu1 %v1695_v2  ;;  %2773 = vmatprep.mubr.msk.bf16.mxu1 %vm3052_vm1, %v3051_v33 }
 0x2ea   : > { %2783 = vmatprep.subr.bf16.mxu1 %v3051_v33 }
 0x2f0   : > { %2774 = vmatmul.mubr.msk.bf16.vlgmr.msra.gmra.mrb[24].mxu1 %vm986_vm3, %v1688_v4 }
 0x2f1   : > { %2784 = vmatpush3.bf16.xpose.msra.mxu1 %v1807_v5  ;;  %2785 = vmatprep.mubr.msk.bf16.mxu1 %vm3052_vm1, %v3051_v33 }
 0x2f2   : > { %2795 = vmatprep.subr.bf16.mxu1 %v3051_v33 }
 0x2f8   : > { %2786 = vmatmul.mubr.msk.bf16.vlgmr.msra.gmra.mrb[28].mxu1 %vm986_vm3, %v1800_v6 }
 0x2f9   : > { %2799 = vmatprep.mubr.msk.bf16.mxu1 %vm3052_vm1, %v3051_v33 }
 0x393   : > { %v1027_v7 = vpop.f32.mrb[0].mxu1 }
 0x394   : > { %v1033_v9 = vmul.f32 0.35355338, %v1027_v7  ;;  %v2703_v10 = vpop.f32.mrb[1].mxu1 }
 0x395   : > { %v1030_v11 = vpop.f32.mrb[2].mxu1 }
 0x396   : > { %v2704_v12 = vpop.f32.mrb[3].mxu1  ;;  %v3368_v13 = vadd.f32 %v2594_v8, %v1033_v9 }
 0x398   : > { %v1041_v14 = vsel %vm986_vm3, %v3368_v13, -inf }
 0x399   : > { %1042 = vmax.xlane.f32.xlu0 %v1041_v14 }
 0x39b   : > { %v1146_v15 = vpop.f32.mrb[4].mxu1 }
 0x39c   : > { %v1152_v16 = vmul.f32 0.35355338, %v1146_v15  ;;  %v2715_v17 = vpop.f32.mrb[5].mxu1 }
 0x39d   : > { %v1149_v18 = vpop.f32.mrb[6].mxu1 }
 0x39e   : > { %v2716_v19 = vpop.f32.mrb[7].mxu1  ;;  %v1153_v20 = vadd.f32 %v2594_v8, %v1152_v16 }
 0x3a0   : > { %v1154_v21 = vsel %vm986_vm3, %v1153_v20, -inf }
 0x3a1   : > { %1155 = vmax.xlane.f32.xlu1 %v1154_v21 }
 0x3a3   : > { %v1258_v22 = vpop.f32.mrb[8].mxu1 }
 0x3a4   : > { %v1264_v23 = vmul.f32 0.35355338, %v1258_v22  ;;  %v2727_v24 = vpop.f32.mrb[9].mxu1 }
 0x3a5   : > { %v1261_v25 = vpop.f32.mrb[10].mxu1 }
 0x3a6   : > { %v2728_v26 = vpop.f32.mrb[11].mxu1  ;;  %v1265_v27 = vadd.f32 %v2594_v8, %v1264_v23 }
 0x3a8   : > { %v1266_v28 = vsel %vm986_vm3, %v1265_v27, -inf }
 0x3a9   : > { %1267 = vmax.xlane.f32.xlu0 %v1266_v28 }
 0x3ab   : > { %v1370_v29 = vpop.f32.mrb[12].mxu1 }
 0x3ac   : > { %v1376_v30 = vmul.f32 0.35355338, %v1370_v29  ;;  %v2739_v31 = vpop.f32.mrb[13].mxu1 }
 0x3ad   : > { %v1373_v32 = vpop.f32.mrb[14].mxu1 }
 0x3ae   : > { %v2740_v34 = vpop.f32.mrb[15].mxu1  ;;  %v3374_v35 = vadd.f32 %v2594_v8, %v1376_v30 }
 0x3b0   : > { %v1378_v36 = vsel %vm986_vm3, %v3374_v35, -inf }
 0x3b1   : > { %1379 = vmax.xlane.f32.xlu0 %v1378_v36 }
 0x3b3   : > { %v1501_v39 = vpop.f32.mrb[16].mxu1 }
 0x3b4   : > { %v1507_v41 = vmul.f32 0.35355338, %v1501_v39  ;;  %v2751_v42 = vpop.f32.mrb[17].mxu1 }
 0x3b5   : > { %v1504_v43 = vpop.f32.mrb[18].mxu1 }
 0x3b6   : > { %v2752_v44 = vpop.f32.mrb[19].mxu1  ;;  %v3381_v46 = vadd.f32 %v2604_v40, %v1507_v41 }
 0x3b8   : > { %v1515_v47 = vsel %vm986_vm3, %v3381_v46, -inf }
 0x3b9   : > { %1516 = vmax.xlane.f32.xlu1 %v1515_v47 }
 0x3bb   : > { %v1619_v49 = vpop.f32.mrb[20].mxu1 }
 0x3bc   : > { %v1625_v50 = vmul.f32 0.35355338, %v1619_v49  ;;  %v2763_v51 = vpop.f32.mrb[21].mxu1 }
 0x3bd   : > { %v1622_v52 = vpop.f32.mrb[22].mxu1 }
 0x3be   : > { %v2764_v53 = vpop.f32.mrb[23].mxu1  ;;  %v3385_v54 = vadd.f32 %v2604_v40, %v1625_v50 }
 0x3c0   : > { %v1627_v55 = vsel %vm986_vm3, %v3385_v54, -inf }
 0x3c1   : > { %1628 = vmax.xlane.f32.xlu0 %v1627_v55 }
 0x3c3   : > { %v1731_v56 = vpop.f32.mrb[24].mxu1 }
 0x3c4   : > { %v1737_v57 = vmul.f32 0.35355338, %v1731_v56  ;;  %v2775_v58 = vpop.f32.mrb[25].mxu1 }
 0x3c5   : > { %v1734_v59 = vpop.f32.mrb[26].mxu1 }
 0x3c6   : > { %v2776_v60 = vpop.f32.mrb[27].mxu1  ;;  %v1738_v61 = vadd.f32 %v2604_v40, %v1737_v57 }
 0x3c8   : > { %v1739_v62 = vsel %vm986_vm3, %v1738_v61, -inf }
 0x3c9   : > { %1740 = vmax.xlane.f32.xlu1 %v1739_v62 }
 0x3cb   : > { %v1843_v63 = vpop.f32.mrb[28].mxu1 }
 0x3cc   : > { %v2787_v0 = vpop.f32.mrb[29].mxu1  ;;  %v1849_v3 = vmul.f32 0.35355338, %v1843_v63 }
 0x3cd   : > { %v1846_v1 = vpop.f32.mrb[30].mxu1 }
 0x3ce   : > { %v2788_v2 = vpop.f32.mrb[31].mxu1  ;;  %v3394_v4 = vadd.f32 %v2604_v40, %v1849_v3 }
 0x3d0   : > { %v1851_v5 = vsel %vm986_vm3, %v3394_v4, -inf }
 0x3d7   : > { %1166 = vrot.lane.b32.xlu0 %v3305_v45, %s3060_s26 }
 0x3da   : > { %1053 = vrot.lane.b32.xlu1 %v3305_v45, %s3061_s18 }
 0x3f6   : > { %1852 = vmax.xlane.f32.xlu0 %v1851_v5 }
 0x426   : > { %v1043_v6 = vpop.xlane.xlu0 %1042 }
 0x427   : > { %v1044_v7 = vsub.f32 %v3368_v13, %v1043_v6 }
 0x429   : > { %v1045_v8 = vmul.f32 1.442695, %v1044_v7 }
 0x42b   : > { %2905 = vpow2.f32 %v1045_v8 }
 0x42e   : > { %v1156_v9 = vpop.xlane.xlu1 %1155 }
 0x42f   : > { %v1157_v10 = vsub.f32 %v1153_v20, %v1156_v9 }
 0x431   : > { %v1158_v11 = vmul.f32 1.442695, %v1157_v10 }
 0x433   : > { %2907 = vpow2.f32 %v1158_v11 }
 0x435   : > { %v3399_v12 = vpop.eup %2905 }
 0x436   : > { %v1268_v14 = vpop.xlane.xlu0 %1267  ;;  %v1047_v15 = vsel %vm986_vm3, %v3399_v12, 0.0 }
 0x437   : > { %v1269_v16 = vsub.f32 %v1265_v27, %v1268_v14  ;;  %1048 = vadd.xlane.f32.xlu1 %v1047_v15 }
 0x439   : > { %v1270_v17 = vmul.f32 1.442695, %v1269_v16 }
 0x43b   : > { %2909 = vpow2.f32 %v1270_v17 }
 0x43d   : > { %v3403_v18 = vpop.eup %2907 }
 0x43e   : > { %v1160_v13 = vsel %vm986_vm3, %v3403_v18, 0.0  ;;  %v1380_v24 = vpop.xlane.xlu0 %1379 }
 0x43f   : > { %1161 = vadd.xlane.f32.xlu0 %v1160_v13  ;;  %v1381_v26 = vsub.f32 %v3374_v35, %v1380_v24 }
 0x441   : > { %v1382_v27 = vmul.f32 1.442695, %v1381_v26 }
 0x443   : > { %2911 = vpow2.f32 %v1382_v27 }
 0x445   : > { %v3407_v19 = vpop.eup %2909 }
 0x446   : > { %v1272_v20 = vsel %vm986_vm3, %v3407_v19, 0.0  ;;  %v1517_v21 = vpop.xlane.xlu1 %1516 }
 0x447   : > { %1273 = vadd.xlane.f32.xlu1 %v1272_v20  ;;  %v1518_v28 = vsub.f32 %v3381_v46, %v1517_v21 }
 0x449   : > { %v1519_v31 = vmul.f32 1.442695, %v1518_v28 }
 0x44b   : > { %2913 = vpow2.f32 %v1519_v31 }
 0x44d   : > { %v2912_v36 = vpop.eup %2911 }
 0x44e   : > { %v1629_v29 = vpop.xlane.xlu0 %1628  ;;  %v1384_v39 = vsel %vm986_vm3, %v2912_v36, 0.0 }
 0x44f   : > { %v1630_v30 = vsub.f32 %v3385_v54, %v1629_v29 }
 0x452   : > { %v1167_v46 = vpop.permute.xlu0 %1166 }
 0x453   : > { %v1172_v58 = vsel %vm1058_vm4, %v1167_v46, 0 }
 0x455   : > { %1278 = vrot.lane.b32.xlu0 %v3305_v45, %s3062_s20  ;;  %v3421_v40 = vpop.eup %2913 }
 0x456   : > { %v1741_v22 = vpop.xlane.xlu1 %1740  ;;  %v1521_v41 = vsel %vm986_vm3, %v3421_v40, 0.0 }
 0x457   : > { %v1742_v32 = vsub.f32 %v1738_v61, %v1741_v22 }
 0x458   : > { %1390 = vrot.lane.b32.xlu1 %v3305_v45, %s3063_s1  ;;  %v1631_v45 = vmul.f32 1.442695, %v1630_v30 }
 0x459   : > { %v1743_v34 = vmul.f32 1.442695, %v1742_v32 }
 0x45a   : > { %v1054_v23 = vpop.permute.xlu1 %1053  ;;  %2915 = vpow2.f32 %v1631_v45 }
 0x45b   : > { %v1060_v25 = vsel %vm1058_vm4, %v1054_v23, 0  ;;  %2917 = vpow2.f32 %v1743_v34 }
 0x45c   : > { %2706 = vmatpush3.bf16.msra.mxu0 %v1060_v25 }
 0x45d   : > { %2717 = vmatprep.subr.bf16.mxu0 %v3051_v33 }
 0x464   : > { %v3423_v35 = vpop.eup %2915 }
 0x465   : > { %v3427_v42 = vpop.eup %2917  ;;  %v1633_v43 = vsel %vm986_vm3, %v3423_v35, 0.0 }
 0x466   : > { %v1745_v44 = vsel %vm986_vm3, %v3427_v42, 0.0 }
 0x474   : > { %1385 = vadd.xlane.f32.xlu0 %v1384_v39 }
 0x478   : > { %1522 = vadd.xlane.f32.xlu0 %v1521_v41 }
 0x47c   : > { %1634 = vadd.xlane.f32.xlu1 %v1633_v43  ;;  %1746 = vadd.xlane.f32.xlu0 %v1745_v44 }
 0x483   : > { %v1853_v47 = vpop.xlane.xlu0 %1852 }
 0x484   : > { %v1854_v49 = vsub.f32 %v3394_v4, %v1853_v47 }
 0x486   : > { %v1855_v50 = vmul.f32 1.442695, %v1854_v49 }
 0x488   : > { %2919 = vpow2.f32 %v1855_v50 }
 0x48d   : > { %1639 = vrot.lane.b32.xlu1 %v3313_v48, %s3060_s26 }
 0x491   : > { %1751 = vrot.lane.b32.xlu1 %v3313_v48, %s3062_s20 }
 0x492   : > { %v3438_v51 = vpop.eup %2919 }
 0x493   : > { %v1857_v52 = vsel %vm986_vm3, %v3438_v51, 0.0 }
 0x494   : > { %1858 = vadd.xlane.f32.xlu0 %v1857_v52 }
 0x495   : > { %1863 = vrot.lane.b32.xlu1 %v3313_v48, %s3063_s1  ;;  %s3730_s1 = scalar_lea.vmem %s3683_s10, %s3204_s24 }
 0x4aa   : > { %1527 = vrot.lane.b32.xlu0 %v3313_v48, %s3061_s18  ;;  %s3734_s18 = sld [smem:[#allocation13_spill]] (!%p2622_p5) }
 0x4c4   : > { %v1049_v53 = vpop.xlane.xlu1 %1048 }
 0x4c5   : > { %2921 = vrcp.f32 %v1049_v53 }
 0x4cc   : > { %v1162_v54 = vpop.xlane.xlu0 %1161 }
 0x4cd   : > { %2923 = vrcp.f32 %v1162_v54 }
 0x4cf   : > { %v2922_v55 = vpop.eup %2921 }
 0x4d0   : > { %v1051_v56 = vmul.f32 %v2922_v55, %v3399_v12  ;;  %v1279_v61 = vpop.permute.xlu0 %1278 }
 0x4d1   : > { %v1284_v63 = vsel %vm1058_vm4, %v1279_v61, 0 }
 0x4d2   : > { %v1052_v57 = vpack.c.bf16 %v1051_v56, %v1051_v56 }
 0x4d4   : > { %2708 = vmatmul.mubr.msk.bf16.vlgmr.msra.gmra.mrb[4].mxu0 %vm986_vm3, %v1052_v57  ;;  %v1274_v59 = vpop.xlane.xlu1 %1273 }
 0x4d5   : > { %2718 = vmatpush3.bf16.msra.mxu0 %v1172_v58  ;;  %2925 = vrcp.f32 %v1274_v59  ;;  %2719 = vmatprep.mubr.msk.bf16.mxu0 %vm3052_vm1, %v3051_v33  ;;  %v1926_v58 = vld [vmem:[%s3219_s4] sm:$0xff]  ;;  %v1927_v59 = vld [vmem:[%s3219_s4 + $0x8] sm:$0xff] }
 0x4d6   : > { %2729 = vmatprep.subr.bf16.mxu0 %v3051_v33  ;;  %v1931_v61 = vpack.c.bf16 %v1927_v59, %v1926_v58 }
 0x4d7   : > { %v2924_v48 = vpop.eup %2923 }
 0x4d8   : > { %v1164_v60 = vmul.f32 %v2924_v48, %v3403_v18  ;;  %v1391_v2 = vpop.permute.xlu1 %1390  ;;  %2796 = vmatpush3.bf16.msra.mxu1 %v1931_v61 }
 0x4d9   : > { %v1396_v4 = vsel %vm1058_vm4, %v1391_v2, 0  ;;  %2797 = vmatprep.subr.bf16.mxu1 %v3051_v33 }
 0x4da   : > { %v1165_v62 = vpack.c.bf16 %v1164_v60, %v1164_v60 }
 0x4dc   : > { %2720 = vmatmul.mubr.msk.bf16.vlgmr.msra.gmra.mrb[8].mxu0 %vm986_vm3, %v1165_v62 }
 0x4dd   : > { %2730 = vmatpush3.bf16.msra.mxu0 %v1284_v63  ;;  %2731 = vmatprep.mubr.msk.bf16.mxu0 %vm3052_vm1, %v3051_v33 }
 0x4de   : > { %2741 = vmatprep.subr.bf16.mxu0 %v3051_v33 }
 0x4df   : > { %v2926_v0 = vpop.eup %2925 }
 0x4e0   : > { %v1276_v1 = vmul.f32 %v2926_v0, %v3407_v19  ;;  %v1928_v0 = vld [vmem:[%s3219_s4 + $0x10] sm:$0xff] }
 0x4e2   : > { %v1277_v3 = vpack.c.bf16 %v1276_v1, %v1276_v1  ;;  %v1929_v1 = vld [vmem:[%s3219_s4 + $0x18] sm:$0xff] }
 0x4e3   : > { %v1932_v2 = vpack.c.bf16 %v1929_v1, %v1928_v0 }
 0x4e4   : > { %2732 = vmatmul.mubr.msk.bf16.vlgmr.msra.gmra.mrb[12].mxu0 %vm986_vm3, %v1277_v3 }
 0x4e5   : > { %2742 = vmatpush3.bf16.msra.mxu0 %v1396_v4  ;;  %2743 = vmatprep.mubr.msk.bf16.mxu0 %vm3052_vm1, %v3051_v33 }
 0x4e6   : > { %2753 = vmatprep.subr.bf16.mxu0 %v3051_v33  ;;  %2798 = vmatpush3.bf16.msra.mxu1 %v1932_v2 }
 0x4e7   : > { %2811 = vmatprep.subr.bf16.mxu1 %v3051_v33 }
 0x501   : > { %v1386_v5 = vpop.xlane.xlu0 %1385 }
 0x502   : > { %2927 = vrcp.f32 %v1386_v5 }
 0x505   : > { %v1523_v9 = vpop.xlane.xlu0 %1522 }
 0x506   : > { %2929 = vrcp.f32 %v1523_v9 }
 0x509   : > { %v1635_v10 = vpop.xlane.xlu1 %1634  ;;  %v1747_v11 = vpop.xlane.xlu0 %1746 }
 0x50a   : > { %2931 = vrcp.f32 %v1635_v10 }
 0x50b   : > { %2933 = vrcp.f32 %v1747_v11 }
 0x50c   : > { %v2928_v6 = vpop.eup %2927 }
 0x50d   : > { %v1388_v7 = vmul.f32 %v2928_v6, %v2912_v36  ;;  %v1640_v18 = vpop.permute.xlu1 %1639 }
 0x50e   : > { %v1645_v20 = vsel %vm1058_vm4, %v1640_v18, 0 }
 0x50f   : > { %v1389_v8 = vpack.c.bf16 %v1388_v7, %v1388_v7 }
 0x510   : > { %v2930_v12 = vpop.eup %2929 }
 0x511   : > { %2744 = vmatmul.mubr.msk.bf16.vlgmr.msra.gmra.mrb[16].mxu0 %vm986_vm3, %v1389_v8  ;;  %v1525_v15 = vmul.f32 %v2930_v12, %v3421_v40  ;;  %v1752_v22 = vpop.permute.xlu1 %1751 }
 0x512   : > { %2755 = vmatprep.mubr.msk.bf16.mxu0 %vm3052_vm1, %v3051_v33  ;;  %v1757_v25 = vsel %vm1058_vm4, %v1752_v22, 0 }
 0x513   : > { %v1526_v13 = vpack.c.bf16 %v1525_v15, %v1525_v15 }
 0x514   : > { %v2932_v19 = vpop.eup %2931 }
 0x515   : > { %v1637_v21 = vmul.f32 %v2932_v19, %v3423_v35  ;;  %v2934_v24 = vpop.eup %2933  ;;  %v1864_v27 = vpop.permute.xlu1 %1863 }
 0x516   : > { %v1749_v26 = vmul.f32 %v2934_v24, %v3427_v42  ;;  %v1869_v30 = vsel %vm1058_vm4, %v1864_v27, 0 }
 0x517   : > { %v1638_v23 = vpack.c.bf16 %v1637_v21, %v1637_v21 }
 0x518   : > { %v1750_v28 = vpack.c.bf16 %v1749_v26, %v1749_v26 }
 0x521   : > { %v1859_v14 = vpop.xlane.xlu0 %1858 }
 0x522   : > { %2935 = vrcp.f32 %v1859_v14 }
 0x525   : > { %v1528_v16 = vpop.permute.xlu0 %1527 }
 0x526   : > { %v1533_v17 = vsel %vm1058_vm4, %v1528_v16, 0 }
 0x527   : > { %2754 = vmatpush3.bf16.msra.mxu0 %v1533_v17 }
 0x528   : > { %2765 = vmatprep.subr.bf16.mxu0 %v3051_v33 }
 0x52a   : > { %2756 = vmatmul.mubr.msk.bf16.vlgmr.msra.gmra.mrb[20].mxu0 %vm986_vm3, %v1526_v13 }
 0x52b   : > { %2766 = vmatpush3.bf16.msra.mxu0 %v1645_v20  ;;  %2767 = vmatprep.mubr.msk.bf16.mxu0 %vm3052_vm1, %v3051_v33 }
 0x52c   : > { %2777 = vmatprep.subr.bf16.mxu0 %v3051_v33  ;;  %v2936_v29 = vpop.eup %2935 }
 0x52d   : > { %v1861_v31 = vmul.f32 %v2936_v29, %v3438_v51  ;;  %v2612_v29 = vld [vmem:[%s3728_s2] ss:$0 sm:$0xff]  ;;  %s3732_s2 = sld [smem:[#allocation19_spill]] (!%p2622_p5) }
 0x52f   : > { %v1862_v32 = vpack.c.bf16 %v1861_v31, %v1861_v31 }
 0x532   : > { %2768 = vmatmul.mubr.msk.bf16.vlgmr.msra.gmra.mrb[24].mxu0 %vm986_vm3, %v1638_v23 }
 0x533   : > { %2778 = vmatpush3.bf16.msra.mxu0 %v1757_v25  ;;  %2779 = vmatprep.mubr.msk.bf16.mxu0 %vm3052_vm1, %v3051_v33 }
 0x534   : > { %2789 = vmatprep.subr.bf16.mxu0 %v3051_v33 }
 0x53a   : > { %2780 = vmatmul.mubr.msk.bf16.vlgmr.msra.gmra.mrb[28].mxu0 %vm986_vm3, %v1750_v28 }
 0x53b   : > { %2790 = vmatpush3.bf16.msra.mxu0 %v1869_v30  ;;  %2791 = vmatprep.mubr.msk.bf16.mxu0 %vm3052_vm1, %v3051_v33 }
 0x53c   : > { %2803 = vmatprep.subr.bf16.mxu0 %v3051_v33 }
 0x542   : > { %2792 = vmatmul.mubr.msk.bf16.vlgmr.msra.gmra.mrb[32].mxu0 %vm986_vm3, %v1862_v32 }
 0x543   : > { %2807 = vmatprep.mubr.msk.bf16.mxu0 %vm3052_vm1, %v3051_v33 }
 0x5a7   : > { %v1096_v45 = vpop.f32.mrb[4].mxu0 }
 0x5a8   : > { %v2709_v34 = vpop.f32.mrb[5].mxu0 }
 0x5a9   : > { %v1099_v36 = vpop.f32.mrb[6].mxu0 }
 0x5aa   : > { %v2710_v39 = vpop.f32.mrb[7].mxu0 }
 0x5af   : > { %v1208_v40 = vpop.f32.mrb[8].mxu0 }
 0x5b0   : > { %v2721_v35 = vpop.f32.mrb[9].mxu0 }
 0x5b1   : > { %v1211_v41 = vpop.f32.mrb[10].mxu0 }
 0x5b2   : > { %v2722_v42 = vpop.f32.mrb[11].mxu0 }
 0x5b7   : > { %v1320_v43 = vpop.f32.mrb[12].mxu0 }
 0x5b8   : > { %v2733_v44 = vpop.f32.mrb[13].mxu0 }
 0x5b9   : > { %v1323_v46 = vpop.f32.mrb[14].mxu0 }
 0x5ba   : > { %v2734_v47 = vpop.f32.mrb[15].mxu0 }
 0x5e4   : > { %v1432_v49 = vpop.f32.mrb[16].mxu0 }
 0x5e5   : > { %v2745_v50 = vpop.f32.mrb[17].mxu0 }
 0x5e6   : > { %v1435_v51 = vpop.f32.mrb[18].mxu0 }
 0x5e7   : > { %v2746_v52 = vpop.f32.mrb[19].mxu0 }
 0x5e8   : > { %v2031_v52 = vld [vmem:[%s3236_s7] sm:$0xff] }
 0x5fd   : > { %v1569_v53 = vpop.f32.mrb[20].mxu0 }
 0x5fe   : > { %v2757_v54 = vpop.f32.mrb[21].mxu0 }
 0x5ff   : > { %v1572_v55 = vpop.f32.mrb[22].mxu0 }
 0x600   : > { %v2758_v56 = vpop.f32.mrb[23].mxu0  ;;  %v2033_v55 = vld [vmem:[%s3236_s7 + $0x10] sm:$0xff] }
 0x601   : > { %v2034_v56 = vld [vmem:[%s3236_s7 + $0x18] sm:$0xff] }
 0x605   : > { %v1681_v57 = vpop.f32.mrb[24].mxu0 }
 0x606   : > { %v2890_v48 = vpack.i.bf16 %v1681_v57, %v1208_v40  ;;  %v2769_v60 = vpop.f32.mrb[25].mxu0  ;;  %v2037_v57 = vpack.c.bf16 %v2034_v56, %v2033_v55 }
 0x607   : > { %v1684_v62 = vpop.f32.mrb[26].mxu0 }
 0x608   : > { %2891 = vrot.lane.b32.xlu1 %v2890_v48, %s3064_s25  ;;  %v2770_v63 = vpop.f32.mrb[27].mxu0  ;;  %s3731_s25 = sld [smem:[#allocation20_spill]] (!%p2622_p5) }
 0x60d   : > { %v1793_v3 = vpop.f32.mrb[28].mxu0 }
 0x60e   : > { %v2895_v4 = vpack.i.bf16 %v1793_v3, %v1320_v43  ;;  %v2781_v5 = vpop.f32.mrb[29].mxu0 }
 0x60f   : > { %v1796_v6 = vpop.f32.mrb[30].mxu0  ;;  %v2615_v5 = vld [vmem:[%s3730_s1] ss:$0 sm:$0xff] }
 0x610   : > { %2896 = vrot.lane.b32.xlu1 %v2895_v4, %s3065_s27  ;;  %v2782_v7 = vpop.f32.mrb[31].mxu0 }
 0x615   : > { %v1905_v8 = vpop.f32.mrb[32].mxu0 }
 0x616   : > { %v2900_v9 = vpack.i.bf16 %v1905_v8, %v1432_v49  ;;  %v2793_v10 = vpop.f32.mrb[33].mxu0 }
 0x617   : > { %v1908_v11 = vpop.f32.mrb[34].mxu0  ;;  %v2107_v10 = vld [vmem:[%s3246_s22] sm:$0xff] }
 0x618   : > { %2901 = vrot.lane.b32.xlu0 %v2900_v9, %s3066_s28  ;;  %v2794_v12 = vpop.f32.mrb[35].mxu0  ;;  %v2108_v11 = vld [vmem:[%s3246_s22 + $0x8] sm:$0xff] }
 0x619   : > { %v2109_v12 = vld [vmem:[%s3246_s22 + $0x10] sm:$0xff] }
 0x67a   : > { %v2892_v14 = vpop.permute.xlu1 %2891 }
 0x67b   : > { %v2894_v16 = vunpack.i.h.bf16 %v2892_v14  ;;  %v2893_v17 = vunpack.i.l.bf16 %v2892_v14  ;;  %v2116_v14 = vpack.c.bf16 %v2108_v11, %v2107_v10 }
 0x67d   : > { %v1923_v20 = vsel %vm986_vm3, %v1569_v53, %v2894_v16  ;;  %v1450_v21 = vsel %vm986_vm3, %v1096_v45, %v2893_v17  ;;  %v2032_v53 = vld [vmem:[%s3236_s7 + $0x8] sm:$0xff]  ;;  %s3729_s7 = scalar_lea.vmem %s3682_s9, %s3204_s24  ;;  %v2111_v17 = vld [vmem:[%s3246_s22 + $0x20] sm:$0xff] }
 0x67e   : > { %v2036_v54 = vpack.c.bf16 %v2032_v53, %v2031_v52  ;;  %v2614_v0 = vld [vmem:[%s3729_s7] ss:$0 sm:$0xff] }
 0x680   : > { %2804 = vmatpush3.bf16.msra.mxu0 %v2036_v54 }
 0x681   : > { %2805 = vmatprep.subr.bf16.mxu0 %v3051_v33 }
 0x682   : > { %v2897_v15 = vpop.permute.xlu1 %2896 }
 0x683   : > { %v2899_v18 = vunpack.i.h.bf16 %v2897_v15  ;;  %v2898_v13 = vunpack.i.l.bf16 %v2897_v15  ;;  %v2110_v15 = vld [vmem:[%s3246_s22 + $0x18] sm:$0xff] }
 0x684   : > { %2806 = vmatpush3.bf16.msra.mxu0 %v2037_v57  ;;  %v2117_v16 = vpack.c.bf16 %v2110_v15, %v2109_v12  ;;  %v2620_v12 = vld [vmem:[%s861_s6] ss:$0 sm:$0xff] }
 0x685   : > { %v1924_v24 = vsel %vm1451_vm5, %v1923_v20, %v2899_v18  ;;  %v1452_v25 = vsel %vm1451_vm5, %v1450_v21, %v2898_v13  ;;  %v2112_v18 = vld [vmem:[%s3246_s22 + $0x28] sm:$0xff]  ;;  %v2114_v20 = vld [vmem:[%s3246_s22 + $0x38] sm:$0xff] }
 0x686   : > { %v2118_v13 = vpack.c.bf16 %v2112_v18, %v2111_v17 }
 0x68a   : > { %v2902_v19 = vpop.permute.xlu0 %2901 }
 0x68b   : > { %v2904_v22 = vunpack.i.h.bf16 %v2902_v19  ;;  %v2903_v23 = vunpack.i.l.bf16 %v2902_v19  ;;  %v2113_v19 = vld [vmem:[%s3246_s22 + $0x30] sm:$0xff] }
 0x68c   : > { %v2119_v21 = vpack.c.bf16 %v2114_v20, %v2113_v19 }
 0x68d   : > { %v1925_v26 = vsel %vm1453_vm6, %v1924_v24, %v2904_v22  ;;  %v1454_v27 = vsel %vm1453_vm6, %v1452_v25, %v2903_v23  ;;  %v2616_v22 = vld [vmem:[%s850_s0] ss:$0 sm:$0xff] }
 0x68e   : > { %v1930_v28 = vpack.c.bf16 %v1925_v26, %v1454_v27 }
 0x690   : > { %2800 = vmatmul.mubr.msk.bf16.vlgmr.msra.gmra.mrb[32].mxu1 %vm936_vm2, %v1930_v28 }
 0x691   : > { %2819 = vmatprep.mubr.msk.bf16.mxu1 %vm3052_vm1, %v3051_v33  ;;  %2812 = vmatpush3.bf16.msra.mxu1 %v2116_v14 }
 0x692   : > { %2813 = vmatprep.subr.bf16.mxu1 %v3051_v33 }
 0x695   : > { %2814 = vmatpush3.bf16.msra.mxu1 %v2117_v16  ;;  %v2621_v16 = vld [vmem:[%s864_s19] ss:$0 sm:$0xff]  ;;  %s3733_s19 = sld [smem:[#allocation21_spill]] (!%p2622_p5) }
 0x696   : > { %2815 = vmatprep.subr.bf16.mxu1 %v3051_v33 }
 0x699   : > { %2816 = vmatpush3.bf16.msra.mxu1 %v2118_v13 }
 0x69a   : > { %2817 = vmatprep.subr.bf16.mxu1 %v3051_v33 }
 0x69d   : > { %2818 = vmatpush3.bf16.msra.mxu1 %v2119_v21  ;;  %v2229_v21 = vld [vmem:[%s3690_s17] sm:$0xff] (!%p2622_p5) }
 0x763   : > { %v1977_v30 = vpop.f32.mrb[32].mxu1 }
 0x764   : > { %v1978_v31 = vadd.f32 %v2612_v29, %v1977_v30  ;;  %v2801_v32 = vpop.f32.mrb[33].mxu1 }
 0x765   : > { %v1980_v45 = vpop.f32.mrb[34].mxu1 }
 0x766   : > { %v1981_v34 = vadd.f32 %v2612_v29, %v1980_v45  ;;  %v2802_v36 = vpop.f32.mrb[35].mxu1  ;;  %v1984_v39 = vadd.f32 %v1978_v31, %v3289_v37 }
 0x768   : > { %v1988_v40 = vsel %vm936_vm2, %v1984_v39, 0.0  ;;  %v1985_v35 = vadd.f32 %v1981_v34, %v3291_v38 }
 0x769   : > { %1989 = vadd.xlane.f32.xlu1 %v1988_v40 }
 0x76a   : > { %v1991_v41 = vsel %vm936_vm2, %v1985_v35, 0.0 }
 0x76b   : > { %1992 = vadd.xlane.f32.xlu0 %v1991_v41 }
 0x7f6   : > { %v1990_v42 = vpop.xlane.xlu1 %1989 }
 0x7f7   : > { %v1995_v43 = vmul.f32 0.03125, %v1990_v42 }
 0x7f8   : > { %v1993_v44 = vpop.xlane.xlu0 %1992 }
 0x7f9   : > { %v1997_v46 = vsub.f32 %v1984_v39, %v1995_v43  ;;  %v1996_v47 = vmul.f32 0.03125, %v1993_v44 }
 0x7fb   : > { %v1998_v49 = vsub.f32 %v1985_v35, %v1996_v47  ;;  %v1999_v50 = vmul.f32 %v1997_v46, %v1997_v46 }
 0x7fd   : > { %v2001_v37 = vsel %vm936_vm2, %v1999_v50, 0.0  ;;  %v2000_v51 = vmul.f32 %v1998_v49, %v1998_v49 }
 0x7fe   : > { %2002 = vadd.xlane.f32.xlu0 %v2001_v37  ;;  %v2618_v37 = vld [vmem:[%s858_s5] ss:$0 sm:$0xff] }
 0x7ff   : > { %v2004_v38 = vsel %vm936_vm2, %v2000_v51, 0.0 }
 0x800   : > { %2005 = vadd.xlane.f32.xlu1 %v2004_v38 }
 0x88b   : > { %v2003_v58 = vpop.xlane.xlu0 %2002 }
 0x88c   : > { %v2007_v59 = vmul.f32 0.03125, %v2003_v58 }
 0x88d   : > { %v2006_v48 = vpop.xlane.xlu1 %2005 }
 0x88e   : > { %v2009_v60 = vadd.f32 1e-12, %v2007_v59  ;;  %v2008_v61 = vmul.f32 0.03125, %v2006_v48 }
 0x890   : > { %2937 = vrsqrt.f32 %v2009_v60  ;;  %v2010_v62 = vadd.f32 1e-12, %v2008_v61 }
 0x892   : > { %2939 = vrsqrt.f32 %v2010_v62 }
 0x89a   : > { %v2938_v63 = vpop.eup %2937 }
 0x89b   : > { %v2013_v1 = vmul.f32 %v2938_v63, %v1997_v46 }
 0x89c   : > { %v2940_v2 = vpop.eup %2939 }
 0x89d   : > { %v2021_v3 = vmul.f32 %v2614_v0, %v2013_v1  ;;  %v2014_v4 = vmul.f32 %v2940_v2, %v1998_v49 }
 0x89f   : > { %v2022_v6 = vmul.f32 %v2614_v0, %v2014_v4  ;;  %v2029_v7 = vadd.f32 %v2615_v5, %v2021_v3 }
 0x8a1   : > { %v2030_v8 = vadd.f32 %v2615_v5, %v2022_v6 }
 0x8a3   : > { %v2035_v9 = vpack.c.bf16 %v2030_v8, %v2029_v7 }
 0x8a5   : > { %2808 = vmatmul.mubr.msk.bf16.vlgmr.msra.gmra.mrb[36].mxu0 %vm936_vm2, %v2035_v9 }
 0x978   : > { %v2082_v23 = vpop.f32.mrb[36].mxu0 }
 0x979   : > { %v2083_v24 = vadd.f32 %v2616_v22, %v2082_v23  ;;  %v2809_v25 = vpop.f32.mrb[37].mxu0  ;;  %v2231_v23 = vld [vmem:[%s3690_s17 + $0x10] sm:$0xff] (!%p2622_p5) }
 0x97a   : > { %v2085_v26 = vpop.f32.mrb[38].mxu0  ;;  %v3067_v25 = vmov (!%p2622_p5), 0.0  }
 0x97b   : > { %v2091_v27 = vmul.f32 0.044715, %v2083_v24  ;;  %v2086_v28 = vadd.f32 %v2616_v22, %v2085_v26  ;;  %v2810_v29 = vpop.f32.mrb[39].mxu0  ;;  %v2089_v43 = vmul.f32 0.5, %v2083_v24  ;;  %v2230_v22 = vld [vmem:[%s3690_s17 + $0x8] sm:$0xff] (!%p2622_p5)  ;;  %2823 = vmatprep.subr.bf16.mxu0 (!%p2622_p5), %v3067_v25  ;;  %2827 = vmatprep.mubr.msk.bf16.mxu0 (!%p2622_p5), %vm3068_vm8, %v3067_v25 }
 0x97c   : > { %v2234_v26 = vpack.c.bf16 (!%p2622_p5), %v2230_v22, %v2229_v21  ;;  %2831 = vmatprep.subr.bf16.mxu1 (!%p2622_p5), %v3067_v25 }
 0x97d   : > { %v2093_v30 = vmul.f32 %v2091_v27, %v2083_v24  ;;  %v2092_v31 = vmul.f32 0.044715, %v2086_v28  ;;  %v2090_v44 = vmul.f32 0.5, %v2086_v28  ;;  %v2232_v27 = vld [vmem:[%s3690_s17 + $0x18] sm:$0xff] (!%p2622_p5) }
 0x97e   : > { %2824 = vmatpush3.bf16.msra.mxu0 (!%p2622_p5), %v2234_v26 }
 0x97f   : > { %v2095_v32 = vmul.f32 %v2093_v30, %v2083_v24  ;;  %v2094_v45 = vmul.f32 %v2092_v31, %v2086_v28  ;;  %2825 = vmatprep.subr.bf16.mxu0 (!%p2622_p5), %v3067_v25  ;;  %v2287_v31 = vld [vmem:[%s3731_s25] sm:$0xff] (!%p2622_p5) }
 0x981   : > { %v2097_v34 = vadd.f32 %v2095_v32, %v2083_v24  ;;  %v2096_v36 = vmul.f32 %v2094_v45, %v2086_v28  ;;  %v2288_v32 = vld [vmem:[%s3731_s25 + $0x8] sm:$0xff] (!%p2622_p5) }
 0x982   : > { %v2292_v45 = vpack.c.bf16 (!%p2622_p5), %v2288_v32, %v2287_v31 }
 0x983   : > { %v2099_v33 = vmul.f32 0.7978846, %v2097_v34  ;;  %v2098_v39 = vadd.f32 %v2096_v36, %v2086_v28  ;;  %v2235_v28 = vpack.c.bf16 (!%p2622_p5), %v2232_v27, %v2231_v23  ;;  %v2289_v34 = vld [vmem:[%s3731_s25 + $0x10] sm:$0xff] (!%p2622_p5)  ;;  %v2290_v36 = vld [vmem:[%s3731_s25 + $0x18] sm:$0xff] (!%p2622_p5) }
 0x985   : > { %2941 = vtanh.f32 %v2099_v33  ;;  %v2100_v40 = vmul.f32 0.7978846, %v2098_v39  ;;  %2826 = vmatpush3.bf16.msra.mxu0 (!%p2622_p5), %v2235_v28  ;;  %v2293_v33 = vpack.c.bf16 (!%p2622_p5), %v2290_v36, %v2289_v34  ;;  %v2623_v39 = vld [vmem:[%s3732_s2] ss:$0 sm:$0xff] (!%p2622_p5) }
 0x987   : > { %2943 = vtanh.f32 %v2100_v40 }
 0x98f   : > { %v2942_v35 = vpop.eup %2941 }
 0x990   : > { %v2103_v41 = vadd.f32 1.0, %v2942_v35 }
 0x991   : > { %v2944_v42 = vpop.eup %2943 }
 0x992   : > { %v2104_v46 = vadd.f32 1.0, %v2944_v42  ;;  %v2105_v47 = vmul.f32 %v2103_v41, %v2089_v43 }
 0x994   : > { %v2106_v49 = vmul.f32 %v2104_v46, %v2090_v44 }
 0x996   : > { %v2115_v50 = vpack.c.bf16 %v2106_v49, %v2105_v47  ;;  %v2625_v47 = vld [vmem:[%s3733_s19] ss:$0 sm:$0xff] (!%p2622_p5) }
 0x998   : > { %2820 = vmatmul.mubr.msk.bf16.vlgmr.msra.gmra.mrb[36].mxu1 %vm2127_vm7, %v2115_v50 }
 0x999   : > { %2835 = vmatprep.mubr.msk.bf16.mxu1 (!%p2622_p5), %vm3068_vm8, %v3067_v25  ;;  %2832 = vmatpush3.bf16.msra.mxu1 (!%p2622_p5), %v2292_v45 }
 0x99a   : > { %2833 = vmatprep.subr.bf16.mxu1 (!%p2622_p5), %v3067_v25 }
 0x99d   : > { %2834 = vmatpush3.bf16.msra.mxu1 (!%p2622_p5), %v2293_v33 }
 0xa6b   : > { %v2165_v51 = vpop.f32.mrb[36].mxu1 }
 0xa6c   : > { %v2166_v38 = vadd.f32 %v2618_v37, %v2165_v51  ;;  %v2821_v52 = vpop.f32.mrb[37].mxu1 }
 0xa6d   : > { %v2168_v53 = vpop.f32.mrb[38].mxu1 }
 0xa6e   : > { %v2169_v54 = vadd.f32 %v2618_v37, %v2168_v53  ;;  %v2822_v55 = vpop.f32.mrb[39].mxu1  ;;  %v2172_v56 = vadd.f32 %v2166_v38, %v2029_v7 }
 0xa70   : > { %v2176_v57 = vsel %vm936_vm2, %v2172_v56, 0.0  ;;  %v2173_v58 = vadd.f32 %v2169_v54, %v2030_v8 }
 0xa71   : > { %2177 = vadd.xlane.f32.xlu0 %v2176_v57 }
 0xa72   : > { %v2179_v59 = vsel %vm936_vm2, %v2173_v58, 0.0 }
 0xa73   : > { %2180 = vadd.xlane.f32.xlu1 %v2179_v59 }
 0xafe   : > { %v2178_v48 = vpop.xlane.xlu0 %2177 }
 0xaff   : > { %v2182_v60 = vmul.f32 0.03125, %v2178_v48 }
 0xb00   : > { %v2181_v61 = vpop.xlane.xlu1 %2180 }
 0xb01   : > { %v2184_v62 = vsub.f32 %v2172_v56, %v2182_v60  ;;  %v2183_v63 = vmul.f32 0.03125, %v2181_v61 }
 0xb03   : > { %v2185_v0 = vsub.f32 %v2173_v58, %v2183_v63  ;;  %v2186_v1 = vmul.f32 %v2184_v62, %v2184_v62 }
 0xb05   : > { %v2188_v2 = vsel %vm936_vm2, %v2186_v1, 0.0  ;;  %v2187_v3 = vmul.f32 %v2185_v0, %v2185_v0 }
 0xb06   : > { %2189 = vadd.xlane.f32.xlu0 %v2188_v2 }
 0xb07   : > { %v2191_v4 = vsel %vm936_vm2, %v2187_v3, 0.0 }
 0xb08   : > { %2192 = vadd.xlane.f32.xlu1 %v2191_v4 }
 0xb93   : > { %v2190_v5 = vpop.xlane.xlu0 %2189 }
 0xb94   : > { %v2194_v6 = vmul.f32 0.03125, %v2190_v5 }
 0xb95   : > { %v2193_v7 = vpop.xlane.xlu1 %2192 }
 0xb96   : > { %v2196_v8 = vadd.f32 1e-12, %v2194_v6  ;;  %v2195_v9 = vmul.f32 0.03125, %v2193_v7 }
 0xb98   : > { %2945 = vrsqrt.f32 %v2196_v8  ;;  %v2197_v10 = vadd.f32 1e-12, %v2195_v9 }
 0xb9a   : > { %2947 = vrsqrt.f32 %v2197_v10 }
 0xba2   : > { %v2946_v11 = vpop.eup %2945 }
 0xba3   : > { %v2200_v14 = vmul.f32 %v2946_v11, %v2184_v62  ;;  %v2361_v62 = vld [vmem:[%s3734_s18] sm:$0x3] (!%p2622_p5) }
 0xba4   : > { %v2948_v15 = vpop.eup %2947 }
 0xba5   : > { %v2208_v17 = vmul.f32 %v2620_v12, %v2200_v14  ;;  %v2201_v18 = vmul.f32 %v2948_v15, %v2185_v0  ;;  %2223 = sbr.rel (%p2622_p5) target bundleno = 3913 (0xf49), region = 112 }
 0xba7   : > { %v2216_v13 = vadd.f32 %v2621_v16, %v2208_v17  ;;  %v2209_v19 = vmul.f32 %v2620_v12, %v2201_v18 }
 0xba9   : > { %2218 = vst.msk [vmem:[#allocation2] sm:$0xff] %vm936_vm2, %v2216_v13  ;;  %v2217_v20 = vadd.f32 %v2621_v16, %v2209_v19 }
 0xbab   : > { %2219 = vst.msk [vmem:[#allocation2 + $0x8] sm:$0xff] %vm936_vm2, %v2217_v20  ;;  %v2225_v24 = vrot.slane (!%p2622_p5), %v2217_v20, 7 }
 0xbad   : > { %v2228_v29 = vsel %vm2227_vm9, %v2216_v13, %v2225_v24 }
 0xbae   : > { %v2233_v30 = vpack.c.bf16 %v2228_v29, %v2228_v29 }
 0xbb0   : > { %2828 = vmatmul.mubr.msk.bf16.vlgmr.msra.gmra.mrb[0].mxu0 %vm936_vm2, %v2233_v30 }
 0xc83   : > { %v2280_v40 = vpop.f32.mrb[0].mxu0 }
 0xc84   : > { %v2281_v35 = vadd.f32 %v2623_v39, %v2280_v40  ;;  %v2829_v41 = vpop.f32.mrb[1].mxu0 }
 0xc85   : > { %v2283_v42 = vpop.f32.mrb[2].mxu0 }
 0xc86   : > { %2949 = vtanh.f32 %v2281_v35  ;;  %v2830_v43 = vpop.f32.mrb[3].mxu0 }
 0xc90   : > { %v2950_v44 = vpop.eup %2949 }
 0xc91   : > { %v2291_v46 = vpack.c.bf16 %v2950_v44, %v2950_v44 }
 0xc93   : > { %2836 = vmatmul.mubr.msk.bf16.vlgmr.msra.gmra.mrb[0].mxu1 %vm936_vm2, %v2291_v46 }
 0xd66   : > { %v2338_v49 = vpop.f32.mrb[0].mxu1 }
 0xd67   : > { %v2339_v50 = vadd.f32 %v2625_v47, %v2338_v49  ;;  %v2837_v37 = vpop.f32.mrb[1].mxu1 }
 0xd68   : > { %v2341_v51 = vpop.f32.mrb[2].mxu1 }
 0xd69   : > { %2345 = vst.msk [vmem:[#allocation3] sm:$0x3] %vm2344_vm10, %v2339_v50  ;;  %v2838_v38 = vpop.f32.mrb[3].mxu1  ;;  %v2346_v52 = vsel %vm2344_vm10, %v2339_v50, -inf }
 0xd6a   : > { %2347 = vmax.xlane.f32.xlu0 %v2346_v52 }
 0xdf7   : > { %v2348_v53 = vpop.xlane.xlu0 %2347 }
 0xdf8   : > { %v2349_v54 = vsub.f32 %v2339_v50, %v2348_v53 }
 0xdfa   : > { %v2350_v55 = vmul.f32 1.442695, %v2349_v54 }
 0xdfc   : > { %2951 = vpow2.f32 %v2350_v55 }
 0xe06   : > { %v2952_v56 = vpop.eup %2951 }
 0xe07   : > { %v2352_v57 = vsel %vm2344_vm10, %v2952_v56, 0.0 }
 0xe08   : > { %2353 = vadd.xlane.f32.xlu0 %v2352_v57 }
 0xe95   : > { %v2354_v58 = vpop.xlane.xlu0 %2353 }
 0xe96   : > { %2953 = vrcp.f32 %v2354_v58 }
 0xe97   : > { %2955 = vlog2.f32 %v2354_v58 }
 0xea0   : > { %v2954_v59 = vpop.eup %2953 }
 0xea1   : > { %v2956_v48 = vpop.eup %2955  ;;  %v2356_v60 = vmul.f32 %v2954_v59, %v2952_v56 }
 0xea2   : > { %v2359_v61 = vmul.f32 0.6931472, %v2956_v48 }
 0xea3   : > { %2357 = vst.msk [vmem:[#allocation5] sm:$0x3] %vm2344_vm10, %v2356_v60 }
 0xea4   : > { %v2360_v63 = vsub.f32 %v2349_v54, %v2359_v61 }
 0xea6   : > { %v2362_v0 = vmul.f32 %v2361_v62, %v2360_v63 }
 0xea8   : > { %v2363_v1 = vsel %vm2344_vm10, %v2362_v0, 0.0 }
 0xea9   : > { %2364 = vadd.xlane.f32.xlu1 %v2363_v1 }
 0xf36   : > { %v2365_v2 = vpop.xlane.xlu1 %2364 }
 0xf37   : > { %v2366_v3 = vsub.f32 0.0, %v2365_v2 }
 0xf39   : > { %v2368_v4 = vsel %vm2367_vm11, %v2366_v3, 0.0 }
 0xf3a   : > { %v2369_v5 = vrot.slane %v2368_v4, 4 }
 0xf3c   : > { %v2370_v6 = vadd.f32 %v2369_v5, %v2368_v4 }
 0xf3e   : > { %v2371_v7 = vrot.slane %v2370_v6, 2 }
 0xf40   : > { %v2372_v8 = vadd.f32 %v2371_v7, %v2370_v6 }
 0xf42   : > { %v2373_v9 = vrot.slane %v2372_v8, 1 }
 0xf44   : > { %v2374_v10 = vadd.f32 %v2373_v9, %v2372_v8 }
 0xf46   : > { %v2376_v11 = vmul.f32 0.5, %v2374_v10 }
 0xf48   : > { %2378 = vst.msk [vmem:[#allocation7] sm:$0x1] %vm2377_vm12, %v2376_v11 }
 0xf49 PF: > { %p2851_p6 = scmp.eq.s32.totalorder %s3198_s30, 1  ;;  %s3069_s20 = smov [#allocation5]  }
 0xf4a   : > { %s2397_s1 = sshll.u32 %s3069_s20, 4  ;;  %s3070_s27 = smov [#allocation3]   ;;  %s2398_s1 = int_to_ptr.vmem [resolvable:$true] %s2397_s1 }
 0xf4b   : > { %s2386_s22 = sshll.u32 %s3070_s27, 4  ;;  %s2957_s0 = scalar_lea.vmem %s2398_s1, 32  ;;  %s2387_s22 = int_to_ptr.vmem [resolvable:$true] %s2386_s22 }
 0xf4c   : > { %p2958_p7 = scmp.ne.s32.totalorder %s2398_s1, %s2957_s0  ;;  %p2964_p10 = scmp.lt.s32.totalorder %s2398_s1, %s2398_s1 }
 0xf4d   : > { %p2965_p11 = scmp.lt.s32.totalorder %s2957_s0, %s2957_s0 }
 0xf4e   : > { %p2959_p8 = pnand %p2958_p7, %p2851_p6 }
 0xf4f   : > { %p2966_p12 = por %p2965_p11, %p2964_p10 }
 0xf50   : > { %p2960_p9 = pneg %p2959_p8 }
 0xf52   : > { %p2967_p13 = pnand %p2966_p12, %p2960_p9 }
 0xf54   : > { %2970 = shalt.err (!%p2967_p13)
}
 0xf55   : > { %s3735_s4 = sld [smem:[#allocation23_spill]] }
 0xf5b   : > { %s3736_s29 = smov %s3735_s4  ;;  %s2971_s6 = scalar_lea.hbm %s3735_s4, 32 }
 0xf5c   : > { %p2972_p0 = scmp.ne.s32.totalorder %s3736_s29, %s2971_s6  ;;  %p2977_p3 = scmp.lt.u32.totalorder %s2971_s6, %s3736_s29 }
 0xf5e   : > { %p2973_p1 = pnand %p2972_p0, %p2851_p6 }
 0xf60   : > { %p2974_p2 = pneg %p2973_p1 }
 0xf62   : > { %p2979_p4 = pnand %p2977_p3, %p2974_p2 }
 0xf64   : > { %2982 = shalt.err (!%p2979_p4)
}
 0xf65   : > { %2842 = dma.vmem_to_hbm [thread:$0]  (%p2851_p6), %s2398_s1, 32, %s3736_s29, [#allocation6]  }
 0xf66   : > { %s2983_s18 = scalar_lea.vmem %s2387_s22, 32  ;;  %p2990_p9 = scmp.lt.s32.totalorder %s2387_s22, %s2387_s22 }
 0xf67   : > { %p2984_p5 = scmp.ne.s32.totalorder %s2387_s22, %s2983_s18  ;;  %p2991_p10 = scmp.lt.s32.totalorder %s2983_s18, %s2983_s18 }
 0xf69   : > { %p2985_p7 = pnand %p2984_p5, %p2851_p6  ;;  %p2992_p11 = por %p2991_p10, %p2990_p9 }
 0xf6b   : > { %p2986_p8 = pneg %p2985_p7 }
 0xf6d   : > { %p2993_p12 = pnand %p2992_p11, %p2986_p8 }
 0xf6f   : > { %2996 = shalt.err (!%p2993_p12)
}
 0xf70   : > { %s3737_s0 = sld [smem:[#allocation22_spill]] }
 0xf76   : > { %s2997_s5 = scalar_lea.hbm %s3737_s0, 32 }
 0xf77   : > { %p2998_p13 = scmp.ne.s32.totalorder %s3737_s0, %s2997_s5  ;;  %p3003_p2 = scmp.lt.u32.totalorder %s2997_s5, %s3737_s0 }
 0xf79   : > { %p2999_p0 = pnand %p2998_p13, %p2851_p6 }
 0xf7b   : > { %p3000_p1 = pneg %p2999_p0 }
 0xf7d   : > { %p3005_p3 = pnand %p3003_p2, %p3000_p1 }
 0xf7f   : > { %3008 = shalt.err (!%p3005_p3)
}
 0xf80   : > { %2840 = dma.vmem_to_hbm [thread:$0]  (%p2851_p6), %s2387_s22, 32, %s3737_s0, [#allocation4]  }
 0xf81   : > { %s3071_s26 = smov [#allocation7]  }
 0xf82   : > { %s2408_s19 = sshll.u32 %s3071_s26, 4  ;;  %s2409_s19 = int_to_ptr.vmem [resolvable:$true] %s2408_s19 }
 0xf83   : > { %s3009_s24 = scalar_lea.vmem %s2409_s19, 16  ;;  %s3015_s7 = scalar_lea.vmem %s2409_s19, 32 }
 0xf84   : > { %p3010_p4 = scmp.ne.s32.totalorder %s2409_s19, %s3009_s24  ;;  %p3016_p8 = scmp.lt.s32.totalorder %s2409_s19, %s2409_s19 }
 0xf85   : > { %p3017_p9 = scmp.lt.s32.totalorder %s3015_s7, %s3009_s24 }
 0xf86   : > { %p3011_p5 = pnand %p3010_p4, %p2851_p6 }
 0xf87   : > { %p3018_p10 = por %p3017_p9, %p3016_p8 }
 0xf88   : > { %p3012_p7 = pneg %p3011_p5 }
 0xf8a   : > { %p3019_p11 = pnand %p3018_p10, %p3012_p7 }
 0xf8c   : > { %3022 = shalt.err (!%p3019_p11)
}
 0xf8d   : > { %s3738_s27 = sld [smem:[#allocation24_spill]] }
 0xf93   : > { %s3023_s5 = scalar_lea.hbm %s3738_s27, 16 }
 0xf94   : > { %p3024_p12 = scmp.ne.s32.totalorder %s3738_s27, %s3023_s5  ;;  %p3029_p1 = scmp.lt.u32.totalorder %s3023_s5, %s3738_s27 }
 0xf96   : > { %p3025_p13 = pnand %p3024_p12, %p2851_p6 }
 0xf98   : > { %p3026_p0 = pneg %p3025_p13 }
 0xf9a   : > { %p3031_p2 = pnand %p3029_p1, %p3026_p0 }
 0xf9c   : > { %3034 = shalt.err (!%p3031_p2)
}
 0xf9d   : > { %2844 = dma.vmem_to_hbm [thread:$0]  (%p2851_p6), %s2409_s19, 16, %s3738_s27, [#allocation6]  }
 0xf9e   : > { %3040 = dma.done.wait (%p2851_p6), [#allocation4], 32  }
 0xf9f   : > { %3042 = vsyncadd (%p2851_p6), [#allocation4], 4294967264 }
 0xfa0   : > { %3044 = dma.done.wait (%p2851_p6), [#allocation6], 48  }
 0xfa1   : > { %3046 = vsyncadd (%p2851_p6), [#allocation6], 4294967248 }
 0xfa2 PF: > { %s3739_s23 = sld [smem:[#allocation10_spill]] }
 0xfa8   : > { %s36_s4 = sadd.s32 1, %s3739_s23  }
 0xfa9   : > { %p33_p3 = scmp.ge.s32.totalorder %s36_s4, 4  }
 0xfab   :  { %35 = sbr.rel (!%p33_p3) target bundleno = 17 (0x11), region = 189 }
 0xfb2   :  { %2429 = vsyncpa [#allocation4], 1 }
 0xfb3   :  { %2431 = vsyncpa [#allocation4 + $0x1], 1 }
 0xfb4   :  { %2432 = vsyncpa [#allocation6], 1 }

</bundles_post_ra>
